<compile_context>
chip_gen: v7x
topology: tpu7x:2x2x1
jax: 0.10.0
libtpu: 0.0.40
codegen_flags: <defaults>
</compile_context>

<pallas_src>
import math
from functools import partial

import numpy as np
import jax
import jax.numpy as jnp
from jax.experimental import pallas as pl
from jax.experimental.pallas import tpu as pltpu

# ----------------------------- configuration --------------------------------
B = 2            # batch
T_FRAMES = 128   # mel frames ("W") — multiple of 128 => lane-dense
MEL = 16         # n_mel_channels ("H")
HID = 32         # encoder hidden (cond channels)
RES = 32         # denoiser residual channels
LAYERS = 2       # denoiser residual layers
NUM_TIMESTEPS = 4

# TODO(synk): stats.json / mel_normalize source not available; fixed min-max
# normalization to [-1, 1] as the DiffSinger-family norm_spec.
MEL_MIN, MEL_MAX = -4.0, 4.0

# TODO(synk): get_noise_schedule_list source not available; linear beta schedule.
_betas = np.linspace(1e-4, 6e-2, NUM_TIMESTEPS).astype(np.float64)
_alphas_cumprod = np.cumprod(1.0 - _betas)
SQRT_ALPHAS_CUMPROD = jnp.asarray(np.sqrt(_alphas_cumprod), jnp.float32)
SQRT_ONE_MINUS_ALPHAS_CUMPROD = jnp.asarray(
    np.sqrt(1.0 - _alphas_cumprod), jnp.float32)


# --------------------- per-generation static configuration -------------------
def _tpu_generation():
  try:
    kind = jax.devices()[0].device_kind.lower()
  except Exception:
    return 0
  for gen in (7, 6, 5, 4):
    if (f"v{gen}" in kind) or (f"{gen}x" in kind) or (f"{gen}e" in kind):
      return gen
  return 0


_GEN = _tpu_generation()
# v5e/v6e (single TC): merge batch into lanes (N = B*T) — one grid step.
# v7x: keep grid=(B,) "parallel" so each TensorCore takes one batch element.
MERGE_BATCH = _GEN < 7
# bf16 EUP exists on v6e/v7x; keep f32 gating on v5e / unknown.
GATE_BF16 = _GEN >= 6


# ------------------------------- fused kernel --------------------------------
def _fused_forward_kernel(
    qa_ref, qs_ref, qb_ref,                      # (1, 1, TB) lane-dense rows
    mel_ref, noise_ref, cond_ref, keep_ref, temb_ref,
    w_in_ref, b_in_ref, w_x_ref, w_c_ref, b_cat_ref, w_o_ref, b_o_ref,
    w_s_ref, b_s_ref, w_out_ref, b_out_ref,
    noised_ref, eps_ref, loss_ref,
    *, layers, res_ch, gate_bf16):
  """One grid step; everything channel-major (C, TB), TB lane-dense."""
  bf16 = jnp.bfloat16
  c = res_ch

  # ---- fused norm_spec + q_sample (single FMA per element) ----
  mel_ct = mel_ref[0]                                  # (MEL, TB) f32
  noise_ct = noise_ref[0]                              # (MEL, TB) f32
  noised_ct = mel_ct * qa_ref[0] + noise_ct * qb_ref[0] + qs_ref[0]
  noised_ref[0] = noised_ct                            # dense store

  cond_bf = cond_ref[0].astype(bf16)                   # (HID, TB)

  # ---- denoiser input projection (ReLU) ----
  h = jnp.maximum(
      jnp.dot(w_in_ref[...], noised_ct.astype(bf16),
              preferred_element_type=jnp.float32) + b_in_ref[...], 0.0)  # (C,TB)

  # ---- cond contribution for ALL layers, hoisted off the serial chain ----
  cond_contrib = jnp.dot(w_c_ref[...], cond_bf,
                         preferred_element_type=jnp.float32)   # (L*2C, TB)

  # ---- residual layers (statically unrolled) ----
  skip = jnp.zeros_like(h)
  inv_sqrt2 = 1.0 / math.sqrt(2.0)
  for l in range(layers):
    hl = (h + temb_ref[0, l]).astype(bf16)             # (C, TB)
    y = (jnp.dot(w_x_ref[l], hl, preferred_element_type=jnp.float32)
         + cond_contrib[2 * c * l:2 * c * (l + 1)]
         + b_cat_ref[l])                               # (2C, TB) f32
    gate = y[:c]
    filt = y[c:]
    if gate_bf16:
      z = jax.nn.sigmoid(gate.astype(bf16)) * jnp.tanh(filt.astype(bf16))
    else:
      z = (jax.nn.sigmoid(gate) * jnp.tanh(filt)).astype(bf16)
    o = jnp.dot(w_o_ref[l], z, preferred_element_type=jnp.float32) \
        + b_o_ref[l]                                   # (2C, TB)
    h = (h + o[:c]) * inv_sqrt2
    skip = skip + o[c:]
  skip = skip * (1.0 / math.sqrt(layers))

  # ---- skip projection (ReLU) + output projection ----
  ys = jnp.maximum(
      jnp.dot(w_s_ref[...], skip.astype(bf16),
              preferred_element_type=jnp.float32) + b_s_ref[...], 0.0)
  eps_ct = jnp.dot(w_out_ref[...], ys.astype(bf16),
                   preferred_element_type=jnp.float32) + b_out_ref[...]  # (MEL,TB)
  eps_ref[0] = eps_ct                                  # dense store

  # ---- fused masked L1 partial sum ----
  masked = jnp.abs(noise_ct - eps_ct) * keep_ref[0]    # (MEL, TB) * (1, TB)
  loss_ref[0] = jnp.sum(masked, keepdims=True)         # (1, 1)


# ---------------------------- pallas wrapper ----------------------------------
def fused_forward(params, mel_cm, noise_cm, cond_cm, keep, temb,
                  qa_row, qs_row, qb_row, *, gate_bf16):
  nb, m, tb = mel_cm.shape
  hid = cond_cm.shape[1]
  c = RES
  L = LAYERS

  all_args = (qa_row, qs_row, qb_row, mel_cm, noise_cm, cond_cm, keep, temb,
              params["w_in"], params["b_in"], params["w_x"], params["w_c"],
              params["b_cat"], params["w_o"], params["b_o"],
              params["w_s"], params["b_s"], params["w_out"], params["b_out"])

  # advisory cost estimate so XLA overlaps the glue (RNG / step-emb MLP) with us
  ncols = nb * tb
  matmul_flops = 2 * ncols * (c * m + L * 2 * c * (c + hid)
                              + L * 2 * c * c + c * c + m * c)
  elem_flops = ncols * (8 * m + L * 12 * c + 4 * c)
  flops = int(matmul_flops + elem_flops)
  transcendentals = int(ncols * L * 2 * c)
  bytes_accessed = int(sum(int(np.prod(a.shape)) * a.dtype.itemsize
                           for a in all_args)
                       + 2 * nb * m * tb * 4 + nb * 4)

  def data3():
    return pl.BlockSpec((1,) + (None,), None)  # placeholder (unused)

  def blk3(shape):
    return pl.BlockSpec((1, shape[1], shape[2]), lambda i: (i, 0, 0))

  def full(shape):
    nd = len(shape)
    return pl.BlockSpec(shape, lambda i, _n=nd: (0,) * _n)

  in_specs = [
      blk3(qa_row.shape), blk3(qs_row.shape), blk3(qb_row.shape),
      blk3(mel_cm.shape), blk3(noise_cm.shape), blk3(cond_cm.shape),
      blk3(keep.shape),
      pl.BlockSpec((1, L, c, tb), lambda i: (i, 0, 0, 0)),        # temb
      full((c, m)), full((c, 1)),                                 # w_in, b_in
      full((L, 2 * c, c)),                                        # w_x
      full((L * 2 * c, hid)),                                     # w_c (stacked)
      full((L, 2 * c, 1)),                                        # b_cat
      full((L, 2 * c, c)), full((L, 2 * c, 1)),                   # w_o, b_o
      full((c, c)), full((c, 1)),                                 # w_s, b_s
      full((m, c)), full((m, 1)),                                 # w_out, b_out
  ]
  out_specs = (
      pl.BlockSpec((1, m, tb), lambda i: (i, 0, 0)),              # noised (CM)
      pl.BlockSpec((1, m, tb), lambda i: (i, 0, 0)),              # epsilon (CM)
      pl.BlockSpec((1, 1, 1), lambda i: (i, 0, 0)),               # loss partial
  )
  out_shape = (
      jax.ShapeDtypeStruct((nb, m, tb), jnp.float32),
      jax.ShapeDtypeStruct((nb, m, tb), jnp.float32),
      jax.ShapeDtypeStruct((nb, 1, 1), jnp.float32),
  )
  return pl.pallas_call(
      partial(_fused_forward_kernel, layers=L, res_ch=c, gate_bf16=gate_bf16),
      out_shape=out_shape,
      grid=(nb,),
      in_specs=in_specs,
      out_specs=out_specs,
      compiler_params=pltpu.CompilerParams(dimension_semantics=("parallel",)),
      cost_estimate=pl.CostEstimate(flops=flops,
                                    transcendentals=transcendentals,
                                    bytes_accessed=bytes_accessed),
  )(*all_args)


# ------------------------ layout plumbing (wrapper / XLA) ----------------------
def _cm_layout(x_bct, merge):
  """(B, C, T) -> (1, C, B*T) if merge else unchanged (B, C, T)."""
  b, c, t = x_bct.shape
  if merge:
    return jnp.transpose(x_bct, (1, 0, 2)).reshape(1, c, b * t)
  return x_bct


def _row_layout(v, merge, tframes):
  """(B,) per-batch scalar -> lane-dense row(s)."""
  b = v.shape[0]
  if merge:
    return jnp.repeat(v, tframes).reshape(1, 1, b * tframes)
  return jnp.broadcast_to(v[:, None, None], (b, 1, tframes))


def _temb_layout(temb_blc, merge, tframes):
  """(B, L, C) -> (NB, L, C, TB) pre-broadcast per column."""
  b, L, c = temb_blc.shape
  if merge:
    x = jnp.transpose(temb_blc, (1, 2, 0))[..., None]           # (L, C, B, 1)
    x = jnp.broadcast_to(x, (L, c, b, tframes))
    return x.reshape(1, L, c, b * tframes)
  return jnp.broadcast_to(temb_blc[..., None], (b, L, c, tframes))


def _from_cm(y, merge, b, tframes):
  """(NB, C, TB) kernel output -> (B, T, C)."""
  c = y.shape[1]
  if merge:
    return jnp.transpose(y.reshape(c, b, tframes), (1, 2, 0))
  return jnp.transpose(y, (0, 2, 1))


# ------------------------------ glue (plain JAX) -------------------------------
# TODO(synk): Denoiser source not provided; a DiffSinger-style WaveNet denoiser
# is synthesized (dilated k=3 convs replaced by 1x1 channel matmuls).
def _mish(x):
  return x * jnp.tanh(jax.nn.softplus(x))


def _step_embedding(t, dim):
  half = dim // 2
  freqs = jnp.exp(-math.log(10000.0) * jnp.arange(half, dtype=jnp.float32)
                  / max(half - 1, 1))
  args = t.astype(jnp.float32)[:, None] * freqs[None, :]
  return jnp.concatenate([jnp.sin(args), jnp.cos(args)], axis=-1)   # (B, dim)


# ------------------------------- forward --------------------------------------
def gaussian_diffusion_forward(params, mel, cond, mel_mask, rng):
  """Training branch of GaussianDiffusion.forward (mel is not None, l1 loss).

  mel: (B, T, MEL)   cond: (B, T, HID)   mel_mask: (B, T) bool (True = pad).
  Returns (noised_mel (B,T,MEL), epsilon (B,T,MEL), loss scalar, t (B,)).
  """
  b, tframes, m = mel.shape
  rng_t, rng_noise = jax.random.split(rng)
  t = jax.random.randint(rng_t, (b,), 0, NUM_TIMESTEPS)            # long t
  # noise generated directly in channel-major layout (free — fresh RNG)
  noise_cm_b = jax.random.normal(rng_noise, (b, m, tframes), jnp.float32)

  # q_sample coefficients with the norm_spec affine folded in (1 FMA/element).
  a = SQRT_ALPHAS_CUMPROD[t]                                       # (B,)
  bcoef = SQRT_ONE_MINUS_ALPHAS_CUMPROD[t]
  norm_scale = 2.0 / (MEL_MAX - MEL_MIN)
  norm_shift = -2.0 * MEL_MIN / (MEL_MAX - MEL_MIN) - 1.0
  qa = a * norm_scale
  qs = a * norm_shift
  qb = bcoef

  # step-embedding MLP: tiny (B,C) matmuls -> plain JAX glue (overlapped with
  # the fused kernel thanks to the CostEstimate).
  emb = _step_embedding(t, RES)
  emb = _mish(emb @ params["w_mlp1"] + params["b_mlp1"])
  emb = emb @ params["w_mlp2"] + params["b_mlp2"]                  # (B, C)
  temb_blc = jnp.einsum("bc,lcd->bld", emb, params["w_step"]) \
      + params["b_step"][None]                                     # (B, L, C)

  keep_b = (1.0 - mel_mask.astype(jnp.float32))[:, None, :]        # (B, 1, T)

  merge = MERGE_BATCH
  mel_cm = _cm_layout(jnp.transpose(mel, (0, 2, 1)), merge)
  cond_cm = _cm_layout(jnp.transpose(cond, (0, 2, 1)), merge)
  noise_cm = _cm_layout(noise_cm_b, merge)
  keep = _cm_layout(keep_b, merge)
  temb = _temb_layout(temb_blc, merge, tframes)
  qa_row = _row_layout(qa, merge, tframes)
  qs_row = _row_layout(qs, merge, tframes)
  qb_row = _row_layout(qb, merge, tframes)

  noised_cm, eps_cm, loss_part = fused_forward(
      params, mel_cm, noise_cm, cond_cm, keep, temb,
      qa_row, qs_row, qb_row, gate_bf16=GATE_BF16)

  noised = _from_cm(noised_cm, merge, b, tframes)
  epsilon = _from_cm(eps_cm, merge, b, tframes)

  # torch masked_fill().mean(): divide by ALL B*MEL*T elements (incl. padding)
  # — intentional, do not "fix" to a true masked mean.
  loss = jnp.sum(loss_part) / float(b * m * tframes)
  return noised, epsilon, loss, t


# ------------------------------ parameters -------------------------------------
def init_params(key):
  ks = iter(jax.random.split(key, 16))

  def dense(shape, scale=0.1, dtype=jnp.float32):
    return (scale * jax.random.normal(next(ks), shape)).astype(dtype)

  bf = jnp.bfloat16
  return {
      # kernel weights (bf16 MXU operands), f32 biases
      "w_in": dense((RES, MEL), dtype=bf),
      "b_in": jnp.zeros((RES, 1), jnp.float32),
      "w_x": dense((LAYERS, 2 * RES, RES), dtype=bf),            # acts on h+temb
      "w_c": dense((LAYERS * 2 * RES, HID), dtype=bf),           # acts on cond
      "b_cat": jnp.zeros((LAYERS, 2 * RES, 1), jnp.float32),     # b_x + b_c fused
      "w_o": dense((LAYERS, 2 * RES, RES), dtype=bf),
      "b_o": jnp.zeros((LAYERS, 2 * RES, 1), jnp.float32),
      "w_s": dense((RES, RES), dtype=bf),
      "b_s": jnp.zeros((RES, 1), jnp.float32),
      "w_out": dense((MEL, RES), dtype=bf),
      "b_out": jnp.zeros((MEL, 1), jnp.float32),
      # step-embedding MLP (wrapper-side, f32)
      "w_mlp1": dense((RES, 4 * RES)),
      "b_mlp1": jnp.zeros((4 * RES,), jnp.float32),
      "w_mlp2": dense((4 * RES, RES)),
      "b_mlp2": jnp.zeros((RES,), jnp.float32),
      "w_step": dense((LAYERS, RES, RES)),
      "b_step": jnp.zeros((LAYERS, RES), jnp.float32),
  }


# --------------------------------- main ----------------------------------------
if __name__ == "__main__":
  key = jax.random.PRNGKey(0)
  k_param, k_mel, k_cond, k_fwd = jax.random.split(key, 4)

  params = init_params(k_param)
  mel = jax.random.normal(k_mel, (B, T_FRAMES, MEL), jnp.float32)
  cond = jax.random.normal(k_cond, (B, T_FRAMES, HID), jnp.float32)

  # mel_mask: True on padded frames (these are zeroed in the L1 loss).
  frame_idx = jnp.arange(T_FRAMES)
  lengths = jnp.array([T_FRAMES, T_FRAMES - 32])
  mel_mask = frame_idx[None, :] >= lengths[:, None]                # (B, T) bool

  fwd = jax.jit(gaussian_diffusion_forward)
  output, epsilon, loss, t = fwd(params, mel, cond, mel_mask, k_fwd)
  jax.block_until_ready((output, epsilon, loss, t))

  assert output.shape == (B, T_FRAMES, MEL)
  assert epsilon.shape == (B, T_FRAMES, MEL)
  assert loss.shape == ()
  assert bool(jnp.isfinite(loss))
  print("KERNEL_OK")
</pallas_src>

<mosaic_0001>
module attributes {stable_mosaic.version = 11 : i64} {
  func.func @_fused_forward_kernel(%arg0: i32, %arg1: memref<1x1x256xf32, #tpu.memory_space<vmem>>, %arg2: memref<1x1x256xf32, #tpu.memory_space<vmem>>, %arg3: memref<1x1x256xf32, #tpu.memory_space<vmem>>, %arg4: memref<1x16x256xf32, #tpu.memory_space<vmem>>, %arg5: memref<1x16x256xf32, #tpu.memory_space<vmem>>, %arg6: memref<1x32x256xf32, #tpu.memory_space<vmem>>, %arg7: memref<1x1x256xf32, #tpu.memory_space<vmem>>, %arg8: memref<1x2x32x256xf32, #tpu.memory_space<vmem>>, %arg9: memref<32x16xbf16, #tpu.memory_space<vmem>>, %arg10: memref<32x1xf32, #tpu.memory_space<vmem>>, %arg11: memref<2x64x32xbf16, #tpu.memory_space<vmem>>, %arg12: memref<128x32xbf16, #tpu.memory_space<vmem>>, %arg13: memref<2x64x1xf32, #tpu.memory_space<vmem>>, %arg14: memref<2x64x32xbf16, #tpu.memory_space<vmem>>, %arg15: memref<2x64x1xf32, #tpu.memory_space<vmem>>, %arg16: memref<32x32xbf16, #tpu.memory_space<vmem>>, %arg17: memref<32x1xf32, #tpu.memory_space<vmem>>, %arg18: memref<16x32xbf16, #tpu.memory_space<vmem>>, %arg19: memref<16x1xf32, #tpu.memory_space<vmem>>, %arg20: memref<1x16x256xf32, #tpu.memory_space<vmem>>, %arg21: memref<1x16x256xf32, #tpu.memory_space<vmem>>, %arg22: memref<1x1x1xf32, #tpu.memory_space<vmem>>) attributes {dimension_semantics = [#tpu.dimension_semantics<parallel>], iteration_bounds = array<i64: 1>, scalar_prefetch = 0 : i64, scratch_operands = 0 : i64, tpu.core_type = #tpu.core_type<tc>, window_params = [{transform_indices = @transform_0, window_bounds = array<i64: 1, 1, 256>}, {transform_indices = @transform_1, window_bounds = array<i64: 1, 1, 256>}, {transform_indices = @transform_2, window_bounds = array<i64: 1, 1, 256>}, {transform_indices = @transform_3, window_bounds = array<i64: 1, 16, 256>}, {transform_indices = @transform_4, window_bounds = array<i64: 1, 16, 256>}, {transform_indices = @transform_5, window_bounds = array<i64: 1, 32, 256>}, {transform_indices = @transform_6, window_bounds = array<i64: 1, 1, 256>}, {transform_indices = @transform_7, window_bounds = array<i64: 1, 2, 32, 256>}, {pipeline_mode = #tpu.pipeline_mode<synchronous>, transform_indices = @transform_8, window_bounds = array<i64: 32, 16>}, {pipeline_mode = #tpu.pipeline_mode<synchronous>, transform_indices = @transform_9, window_bounds = array<i64: 32, 1>}, {pipeline_mode = #tpu.pipeline_mode<synchronous>, transform_indices = @transform_10, window_bounds = array<i64: 2, 64, 32>}, {pipeline_mode = #tpu.pipeline_mode<synchronous>, transform_indices = @transform_11, window_bounds = array<i64: 128, 32>}, {pipeline_mode = #tpu.pipeline_mode<synchronous>, transform_indices = @transform_12, window_bounds = array<i64: 2, 64, 1>}, {pipeline_mode = #tpu.pipeline_mode<synchronous>, transform_indices = @transform_13, window_bounds = array<i64: 2, 64, 32>}, {pipeline_mode = #tpu.pipeline_mode<synchronous>, transform_indices = @transform_14, window_bounds = array<i64: 2, 64, 1>}, {pipeline_mode = #tpu.pipeline_mode<synchronous>, transform_indices = @transform_15, window_bounds = array<i64: 32, 32>}, {pipeline_mode = #tpu.pipeline_mode<synchronous>, transform_indices = @transform_16, window_bounds = array<i64: 32, 1>}, {pipeline_mode = #tpu.pipeline_mode<synchronous>, transform_indices = @transform_17, window_bounds = array<i64: 16, 32>}, {pipeline_mode = #tpu.pipeline_mode<synchronous>, transform_indices = @transform_18, window_bounds = array<i64: 16, 1>}, {transform_indices = @transform_19, window_bounds = array<i64: 1, 16, 256>}, {transform_indices = @transform_20, window_bounds = array<i64: 1, 16, 256>}, {transform_indices = @transform_21, window_bounds = array<i64: 1, 1, 1>}]} {
    %c0 = arith.constant 0 : index
    %c0_0 = arith.constant 0 : index
    %c0_1 = arith.constant 0 : index
    %0 = vector.load %arg4[%c0, %c0_0, %c0_1] : memref<1x16x256xf32, #tpu.memory_space<vmem>>, vector<1x16x256xf32>
    %1 = vector.shape_cast %0 : vector<1x16x256xf32> to vector<16x256xf32>
    %c0_2 = arith.constant 0 : index
    %c0_3 = arith.constant 0 : index
    %c0_4 = arith.constant 0 : index
    %2 = vector.load %arg5[%c0_2, %c0_3, %c0_4] : memref<1x16x256xf32, #tpu.memory_space<vmem>>, vector<1x16x256xf32>
    %3 = vector.shape_cast %2 : vector<1x16x256xf32> to vector<16x256xf32>
    %c0_5 = arith.constant 0 : index
    %c0_6 = arith.constant 0 : index
    %c0_7 = arith.constant 0 : index
    %4 = vector.load %arg1[%c0_5, %c0_6, %c0_7] : memref<1x1x256xf32, #tpu.memory_space<vmem>>, vector<1x1x256xf32>
    %5 = vector.shape_cast %4 : vector<1x1x256xf32> to vector<1x256xf32>
    %6 = vector.broadcast %5 : vector<1x256xf32> to vector<16x256xf32>
    %7 = arith.mulf %1, %6 : vector<16x256xf32>
    %c0_8 = arith.constant 0 : index
    %c0_9 = arith.constant 0 : index
    %c0_10 = arith.constant 0 : index
    %8 = vector.load %arg3[%c0_8, %c0_9, %c0_10] : memref<1x1x256xf32, #tpu.memory_space<vmem>>, vector<1x1x256xf32>
    %9 = vector.shape_cast %8 : vector<1x1x256xf32> to vector<1x256xf32>
    %10 = vector.broadcast %9 : vector<1x256xf32> to vector<16x256xf32>
    %11 = arith.mulf %3, %10 : vector<16x256xf32>
    %12 = arith.addf %7, %11 : vector<16x256xf32>
    %c0_11 = arith.constant 0 : index
    %c0_12 = arith.constant 0 : index
    %c0_13 = arith.constant 0 : index
    %13 = vector.load %arg2[%c0_11, %c0_12, %c0_13] : memref<1x1x256xf32, #tpu.memory_space<vmem>>, vector<1x1x256xf32>
    %14 = vector.shape_cast %13 : vector<1x1x256xf32> to vector<1x256xf32>
    %15 = vector.broadcast %14 : vector<1x256xf32> to vector<16x256xf32>
    %16 = arith.addf %12, %15 : vector<16x256xf32>
    %c0_14 = arith.constant 0 : index
    %c0_15 = arith.constant 0 : index
    %c0_16 = arith.constant 0 : index
    %17 = vector.load %arg20[%c0_14, %c0_15, %c0_16] : memref<1x16x256xf32, #tpu.memory_space<vmem>>, vector<1x16x256xf32>
    %18 = vector.shape_cast %17 : vector<1x16x256xf32> to vector<16x256xf32>
    %19 = vector.shape_cast %16 : vector<16x256xf32> to vector<1x16x256xf32>
    tpu.vector_store %arg20[%c0_14, %c0_15, %c0_16], %19 {strides = array<i32>} : memref<1x16x256xf32, #tpu.memory_space<vmem>>, vector<1x16x256xf32>,
    %c0_17 = arith.constant 0 : index
    %c0_18 = arith.constant 0 : index
    %c0_19 = arith.constant 0 : index
    %20 = vector.load %arg6[%c0_17, %c0_18, %c0_19] : memref<1x32x256xf32, #tpu.memory_space<vmem>>, vector<1x32x256xf32>
    %21 = vector.shape_cast %20 : vector<1x32x256xf32> to vector<32x256xf32>
    %22 = arith.truncf %21 : vector<32x256xf32> to vector<32x256xbf16>
    %c0_20 = arith.constant 0 : index
    %c0_21 = arith.constant 0 : index
    %23 = vector.load %arg9[%c0_20, %c0_21] : memref<32x16xbf16, #tpu.memory_space<vmem>>, vector<32x16xbf16>
    %24 = arith.truncf %16 : vector<16x256xf32> to vector<16x256xbf16>
    %cst = arith.constant dense<0.000000e+00> : vector<32x256xf32>
    %25 = tpu.matmul %23, %24, %cst {dimension_numbers = #tpu.dot_dimension_numbers<[1], [0], [0], [1], [0, 0, 1, 1], [], []>} : vector<32x16xbf16>, vector<16x256xbf16>, vector<32x256xf32> -> vector<32x256xf32>
    %c0_22 = arith.constant 0 : index
    %c0_23 = arith.constant 0 : index
    %26 = vector.load %arg10[%c0_22, %c0_23] : memref<32x1xf32, #tpu.memory_space<vmem>>, vector<32x1xf32>
    %27 = vector.broadcast %26 : vector<32x1xf32> to vector<32x256xf32>
    %28 = arith.addf %25, %27 : vector<32x256xf32>
    %cst_24 = arith.constant 0.000000e+00 : f32
    %29 = vector.broadcast %cst_24 : f32 to vector<32x256xf32>
    %30 = arith.maximumf %28, %29 : vector<32x256xf32>
    %c0_25 = arith.constant 0 : index
    %c0_26 = arith.constant 0 : index
    %31 = vector.load %arg12[%c0_25, %c0_26] : memref<128x32xbf16, #tpu.memory_space<vmem>>, vector<128x32xbf16>
    %cst_27 = arith.constant dense<0.000000e+00> : vector<128x256xf32>
    %32 = tpu.matmul %31, %22, %cst_27 {dimension_numbers = #tpu.dot_dimension_numbers<[1], [0], [0], [1], [0, 0, 1, 1], [], []>} : vector<128x32xbf16>, vector<32x256xbf16>, vector<128x256xf32> -> vector<128x256xf32>
    %cst_28 = arith.constant 0.000000e+00 : f32
    %33 = vector.broadcast %cst_28 : f32 to vector<32x256xf32>
    %c0_29 = arith.constant 0 : index
    %c0_30 = arith.constant 0 : index
    %c0_31 = arith.constant 0 : index
    %c0_32 = arith.constant 0 : index
    %34 = vector.load %arg8[%c0_29, %c0_30, %c0_31, %c0_32] : memref<1x2x32x256xf32, #tpu.memory_space<vmem>>, vector<1x1x32x256xf32>
    %35 = vector.shape_cast %34 : vector<1x1x32x256xf32> to vector<32x256xf32>
    %36 = arith.addf %30, %35 : vector<32x256xf32>
    %37 = arith.truncf %36 : vector<32x256xf32> to vector<32x256xbf16>
    %c0_33 = arith.constant 0 : index
    %c0_34 = arith.constant 0 : index
    %c0_35 = arith.constant 0 : index
    %38 = vector.load %arg11[%c0_33, %c0_34, %c0_35] : memref<2x64x32xbf16, #tpu.memory_space<vmem>>, vector<1x64x32xbf16>
    %39 = vector.shape_cast %38 : vector<1x64x32xbf16> to vector<64x32xbf16>
    %cst_36 = arith.constant dense<0.000000e+00> : vector<64x256xf32>
    %40 = tpu.matmul %39, %37, %cst_36 {dimension_numbers = #tpu.dot_dimension_numbers<[1], [0], [0], [1], [0, 0, 1, 1], [], []>} : vector<64x32xbf16>, vector<32x256xbf16>, vector<64x256xf32> -> vector<64x256xf32>
    %41 = vector.extract_strided_slice %32 {offsets = [0, 0], sizes = [64, 256], strides = [1, 1]} : vector<128x256xf32> to vector<64x256xf32>
    %42 = arith.addf %40, %41 : vector<64x256xf32>
    %c0_37 = arith.constant 0 : index
    %c0_38 = arith.constant 0 : index
    %c0_39 = arith.constant 0 : index
    %43 = vector.load %arg13[%c0_37, %c0_38, %c0_39] : memref<2x64x1xf32, #tpu.memory_space<vmem>>, vector<1x64x1xf32>
    %44 = vector.shape_cast %43 : vector<1x64x1xf32> to vector<64x1xf32>
    %45 = vector.broadcast %44 : vector<64x1xf32> to vector<64x256xf32>
    %46 = arith.addf %42, %45 : vector<64x256xf32>
    %47 = vector.extract_strided_slice %46 {offsets = [0, 0], sizes = [32, 256], strides = [1, 1]} : vector<64x256xf32> to vector<32x256xf32>
    %48 = vector.extract_strided_slice %46 {offsets = [32, 0], sizes = [32, 256], strides = [1, 1]} : vector<64x256xf32> to vector<32x256xf32>
    %49 = arith.negf %47 : vector<32x256xf32>
    %50 = math.exp %49 : vector<32x256xf32>
    %cst_40 = arith.constant 1.000000e+00 : f32
    %51 = vector.broadcast %cst_40 : f32 to vector<32x256xf32>
    %52 = arith.addf %51, %50 : vector<32x256xf32>
    %53 = arith.divf %51, %52 : vector<32x256xf32>
    %54 = math.tanh %48 : vector<32x256xf32>
    %55 = arith.mulf %53, %54 : vector<32x256xf32>
    %56 = arith.truncf %55 : vector<32x256xf32> to vector<32x256xbf16>
    %c0_41 = arith.constant 0 : index
    %c0_42 = arith.constant 0 : index
    %c0_43 = arith.constant 0 : index
    %57 = vector.load %arg14[%c0_41, %c0_42, %c0_43] : memref<2x64x32xbf16, #tpu.memory_space<vmem>>, vector<1x64x32xbf16>
    %58 = vector.shape_cast %57 : vector<1x64x32xbf16> to vector<64x32xbf16>
    %cst_44 = arith.constant dense<0.000000e+00> : vector<64x256xf32>
    %59 = tpu.matmul %58, %56, %cst_44 {dimension_numbers = #tpu.dot_dimension_numbers<[1], [0], [0], [1], [0, 0, 1, 1], [], []>} : vector<64x32xbf16>, vector<32x256xbf16>, vector<64x256xf32> -> vector<64x256xf32>
    %c0_45 = arith.constant 0 : index
    %c0_46 = arith.constant 0 : index
    %c0_47 = arith.constant 0 : index
    %60 = vector.load %arg15[%c0_45, %c0_46, %c0_47] : memref<2x64x1xf32, #tpu.memory_space<vmem>>, vector<1x64x1xf32>
    %61 = vector.shape_cast %60 : vector<1x64x1xf32> to vector<64x1xf32>
    %62 = vector.broadcast %61 : vector<64x1xf32> to vector<64x256xf32>
    %63 = arith.addf %59, %62 : vector<64x256xf32>
    %64 = vector.extract_strided_slice %63 {offsets = [0, 0], sizes = [32, 256], strides = [1, 1]} : vector<64x256xf32> to vector<32x256xf32>
    %65 = arith.addf %30, %64 : vector<32x256xf32>
    %cst_48 = arith.constant 0.707106769 : f32
    %66 = vector.broadcast %cst_48 : f32 to vector<32x256xf32>
    %67 = arith.mulf %65, %66 : vector<32x256xf32>
    %68 = vector.extract_strided_slice %63 {offsets = [32, 0], sizes = [32, 256], strides = [1, 1]} : vector<64x256xf32> to vector<32x256xf32>
    %69 = arith.addf %33, %68 : vector<32x256xf32>
    %c0_49 = arith.constant 0 : index
    %c1 = arith.constant 1 : index
    %c0_50 = arith.constant 0 : index
    %c0_51 = arith.constant 0 : index
    %70 = vector.load %arg8[%c0_49, %c1, %c0_50, %c0_51] : memref<1x2x32x256xf32, #tpu.memory_space<vmem>>, vector<1x1x32x256xf32>
    %71 = vector.shape_cast %70 : vector<1x1x32x256xf32> to vector<32x256xf32>
    %72 = arith.addf %67, %71 : vector<32x256xf32>
    %73 = arith.truncf %72 : vector<32x256xf32> to vector<32x256xbf16>
    %c1_52 = arith.constant 1 : index
    %c0_53 = arith.constant 0 : index
    %c0_54 = arith.constant 0 : index
    %74 = vector.load %arg11[%c1_52, %c0_53, %c0_54] : memref<2x64x32xbf16, #tpu.memory_space<vmem>>, vector<1x64x32xbf16>
    %75 = vector.shape_cast %74 : vector<1x64x32xbf16> to vector<64x32xbf16>
    %cst_55 = arith.constant dense<0.000000e+00> : vector<64x256xf32>
    %76 = tpu.matmul %75, %73, %cst_55 {dimension_numbers = #tpu.dot_dimension_numbers<[1], [0], [0], [1], [0, 0, 1, 1], [], []>} : vector<64x32xbf16>, vector<32x256xbf16>, vector<64x256xf32> -> vector<64x256xf32>
    %77 = vector.extract_strided_slice %32 {offsets = [64, 0], sizes = [64, 256], strides = [1, 1]} : vector<128x256xf32> to vector<64x256xf32>
    %78 = arith.addf %76, %77 : vector<64x256xf32>
    %c1_56 = arith.constant 1 : index
    %c0_57 = arith.constant 0 : index
    %c0_58 = arith.constant 0 : index
    %79 = vector.load %arg13[%c1_56, %c0_57, %c0_58] : memref<2x64x1xf32, #tpu.memory_space<vmem>>, vector<1x64x1xf32>
    %80 = vector.shape_cast %79 : vector<1x64x1xf32> to vector<64x1xf32>
    %81 = vector.broadcast %80 : vector<64x1xf32> to vector<64x256xf32>
    %82 = arith.addf %78, %81 : vector<64x256xf32>
    %83 = vector.extract_strided_slice %82 {offsets = [0, 0], sizes = [32, 256], strides = [1, 1]} : vector<64x256xf32> to vector<32x256xf32>
    %84 = vector.extract_strided_slice %82 {offsets = [32, 0], sizes = [32, 256], strides = [1, 1]} : vector<64x256xf32> to vector<32x256xf32>
    %85 = arith.negf %83 : vector<32x256xf32>
    %86 = math.exp %85 : vector<32x256xf32>
    %cst_59 = arith.constant 1.000000e+00 : f32
    %87 = vector.broadcast %cst_59 : f32 to vector<32x256xf32>
    %88 = arith.addf %87, %86 : vector<32x256xf32>
    %89 = arith.divf %87, %88 : vector<32x256xf32>
    %90 = math.tanh %84 : vector<32x256xf32>
    %91 = arith.mulf %89, %90 : vector<32x256xf32>
    %92 = arith.truncf %91 : vector<32x256xf32> to vector<32x256xbf16>
    %c1_60 = arith.constant 1 : index
    %c0_61 = arith.constant 0 : index
    %c0_62 = arith.constant 0 : index
    %93 = vector.load %arg14[%c1_60, %c0_61, %c0_62] : memref<2x64x32xbf16, #tpu.memory_space<vmem>>, vector<1x64x32xbf16>
    %94 = vector.shape_cast %93 : vector<1x64x32xbf16> to vector<64x32xbf16>
    %cst_63 = arith.constant dense<0.000000e+00> : vector<64x256xf32>
    %95 = tpu.matmul %94, %92, %cst_63 {dimension_numbers = #tpu.dot_dimension_numbers<[1], [0], [0], [1], [0, 0, 1, 1], [], []>} : vector<64x32xbf16>, vector<32x256xbf16>, vector<64x256xf32> -> vector<64x256xf32>
    %c1_64 = arith.constant 1 : index
    %c0_65 = arith.constant 0 : index
    %c0_66 = arith.constant 0 : index
    %96 = vector.load %arg15[%c1_64, %c0_65, %c0_66] : memref<2x64x1xf32, #tpu.memory_space<vmem>>, vector<1x64x1xf32>
    %97 = vector.shape_cast %96 : vector<1x64x1xf32> to vector<64x1xf32>
    %98 = vector.broadcast %97 : vector<64x1xf32> to vector<64x256xf32>
    %99 = arith.addf %95, %98 : vector<64x256xf32>
    %100 = vector.extract_strided_slice %99 {offsets = [32, 0], sizes = [32, 256], strides = [1, 1]} : vector<64x256xf32> to vector<32x256xf32>
    %101 = arith.addf %69, %100 : vector<32x256xf32>
    %cst_67 = arith.constant 0.707106769 : f32
    %102 = vector.broadcast %cst_67 : f32 to vector<32x256xf32>
    %103 = arith.mulf %101, %102 : vector<32x256xf32>
    %c0_68 = arith.constant 0 : index
    %c0_69 = arith.constant 0 : index
    %104 = vector.load %arg16[%c0_68, %c0_69] : memref<32x32xbf16, #tpu.memory_space<vmem>>, vector<32x32xbf16>
    %105 = arith.truncf %103 : vector<32x256xf32> to vector<32x256xbf16>
    %cst_70 = arith.constant dense<0.000000e+00> : vector<32x256xf32>
    %106 = tpu.matmul %104, %105, %cst_70 {dimension_numbers = #tpu.dot_dimension_numbers<[1], [0], [0], [1], [0, 0, 1, 1], [], []>} : vector<32x32xbf16>, vector<32x256xbf16>, vector<32x256xf32> -> vector<32x256xf32>
    %c0_71 = arith.constant 0 : index
    %c0_72 = arith.constant 0 : index
    %107 = vector.load %arg17[%c0_71, %c0_72] : memref<32x1xf32, #tpu.memory_space<vmem>>, vector<32x1xf32>
    %108 = vector.broadcast %107 : vector<32x1xf32> to vector<32x256xf32>
    %109 = arith.addf %106, %108 : vector<32x256xf32>
    %cst_73 = arith.constant 0.000000e+00 : f32
    %110 = vector.broadcast %cst_73 : f32 to vector<32x256xf32>
    %111 = arith.maximumf %109, %110 : vector<32x256xf32>
    %c0_74 = arith.constant 0 : index
    %c0_75 = arith.constant 0 : index
    %112 = vector.load %arg18[%c0_74, %c0_75] : memref<16x32xbf16, #tpu.memory_space<vmem>>, vector<16x32xbf16>
    %113 = arith.truncf %111 : vector<32x256xf32> to vector<32x256xbf16>
    %cst_76 = arith.constant dense<0.000000e+00> : vector<16x256xf32>
    %114 = tpu.matmul %112, %113, %cst_76 {dimension_numbers = #tpu.dot_dimension_numbers<[1], [0], [0], [1], [0, 0, 1, 1], [], []>} : vector<16x32xbf16>, vector<32x256xbf16>, vector<16x256xf32> -> vector<16x256xf32>
    %c0_77 = arith.constant 0 : index
    %c0_78 = arith.constant 0 : index
    %115 = vector.load %arg19[%c0_77, %c0_78] : memref<16x1xf32, #tpu.memory_space<vmem>>, vector<16x1xf32>
    %116 = vector.broadcast %115 : vector<16x1xf32> to vector<16x256xf32>
    %117 = arith.addf %114, %116 : vector<16x256xf32>
    %c0_79 = arith.constant 0 : index
    %c0_80 = arith.constant 0 : index
    %c0_81 = arith.constant 0 : index
    %118 = vector.load %arg21[%c0_79, %c0_80, %c0_81] : memref<1x16x256xf32, #tpu.memory_space<vmem>>, vector<1x16x256xf32>
    %119 = vector.shape_cast %118 : vector<1x16x256xf32> to vector<16x256xf32>
    %120 = vector.shape_cast %117 : vector<16x256xf32> to vector<1x16x256xf32>
    tpu.vector_store %arg21[%c0_79, %c0_80, %c0_81], %120 {strides = array<i32>} : memref<1x16x256xf32, #tpu.memory_space<vmem>>, vector<1x16x256xf32>,
    %121 = arith.subf %3, %117 : vector<16x256xf32>
    %122 = math.absf %121 : vector<16x256xf32>
    %c0_82 = arith.constant 0 : index
    %c0_83 = arith.constant 0 : index
    %c0_84 = arith.constant 0 : index
    %123 = vector.load %arg7[%c0_82, %c0_83, %c0_84] : memref<1x1x256xf32, #tpu.memory_space<vmem>>, vector<1x1x256xf32>
    %124 = vector.shape_cast %123 : vector<1x1x256xf32> to vector<1x256xf32>
    %125 = vector.broadcast %124 : vector<1x256xf32> to vector<16x256xf32>
    %126 = arith.mulf %122, %125 : vector<16x256xf32>
    %127 = vector.shape_cast %126 : vector<16x256xf32> to vector<1x16x256xf32>
    %cst_85 = arith.constant dense<0.000000e+00> : vector<1xf32>
    %128 = vector.multi_reduction <add>, %127, %cst_85 [1, 2] : vector<1x16x256xf32> to vector<1xf32>
    %129 = vector.shape_cast %128 : vector<1xf32> to vector<1x1x1xf32>
    %130 = vector.extract %129[0, 0, 0] : f32 from vector<1x1x1xf32>
    %131 = vector.broadcast %130 : f32 to vector<1x1xf32>
    %c0_86 = arith.constant 0 : index
    %c0_87 = arith.constant 0 : index
    %c0_88 = arith.constant 0 : index
    %132 = vector.load %arg22[%c0_86, %c0_87, %c0_88] : memref<1x1x1xf32, #tpu.memory_space<vmem>>, vector<1x1x1xf32>
    %133 = vector.shape_cast %132 : vector<1x1x1xf32> to vector<1x1xf32>
    %134 = vector.shape_cast %131 : vector<1x1xf32> to vector<1x1x1xf32>
    tpu.vector_store %arg22[%c0_86, %c0_87, %c0_88], %134 {strides = array<i32>} : memref<1x1x1xf32, #tpu.memory_space<vmem>>, vector<1x1x1xf32>,
    return
  }
  func.func @transform_0(%arg0: i32) -> (i32, i32, i32) {
    %c0_i32 = arith.constant 0 : i32
    %c0_i32_0 = arith.constant 0 : i32
    %c0_i32_1 = arith.constant 0 : i32
    return %arg0, %c0_i32, %c0_i32_0 : i32, i32, i32
  }
  func.func @transform_1(%arg0: i32) -> (i32, i32, i32) {
    %c0_i32 = arith.constant 0 : i32
    %c0_i32_0 = arith.constant 0 : i32
    %c0_i32_1 = arith.constant 0 : i32
    return %arg0, %c0_i32, %c0_i32_0 : i32, i32, i32
  }
  func.func @transform_2(%arg0: i32) -> (i32, i32, i32) {
    %c0_i32 = arith.constant 0 : i32
    %c0_i32_0 = arith.constant 0 : i32
    %c0_i32_1 = arith.constant 0 : i32
    return %arg0, %c0_i32, %c0_i32_0 : i32, i32, i32
  }
  func.func @transform_3(%arg0: i32) -> (i32, i32, i32) {
    %c0_i32 = arith.constant 0 : i32
    %c0_i32_0 = arith.constant 0 : i32
    %c0_i32_1 = arith.constant 0 : i32
    return %arg0, %c0_i32, %c0_i32_0 : i32, i32, i32
  }
  func.func @transform_4(%arg0: i32) -> (i32, i32, i32) {
    %c0_i32 = arith.constant 0 : i32
    %c0_i32_0 = arith.constant 0 : i32
    %c0_i32_1 = arith.constant 0 : i32
    return %arg0, %c0_i32, %c0_i32_0 : i32, i32, i32
  }
  func.func @transform_5(%arg0: i32) -> (i32, i32, i32) {
    %c0_i32 = arith.constant 0 : i32
    %c0_i32_0 = arith.constant 0 : i32
    %c0_i32_1 = arith.constant 0 : i32
    return %arg0, %c0_i32, %c0_i32_0 : i32, i32, i32
  }
  func.func @transform_6(%arg0: i32) -> (i32, i32, i32) {
    %c0_i32 = arith.constant 0 : i32
    %c0_i32_0 = arith.constant 0 : i32
    %c0_i32_1 = arith.constant 0 : i32
    return %arg0, %c0_i32, %c0_i32_0 : i32, i32, i32
  }
  func.func @transform_7(%arg0: i32) -> (i32, i32, i32, i32) {
    %c0_i32 = arith.constant 0 : i32
    %c0_i32_0 = arith.constant 0 : i32
    %c0_i32_1 = arith.constant 0 : i32
    %c0_i32_2 = arith.constant 0 : i32
    return %arg0, %c0_i32, %c0_i32_0, %c0_i32_1 : i32, i32, i32, i32
  }
  func.func @transform_8(%arg0: i32) -> (i32, i32) {
    %c0_i32 = arith.constant 0 : i32
    %c0_i32_0 = arith.constant 0 : i32
    %c0_i32_1 = arith.constant 0 : i32
    return %c0_i32, %c0_i32_0 : i32, i32
  }
  func.func @transform_9(%arg0: i32) -> (i32, i32) {
    %c0_i32 = arith.constant 0 : i32
    %c0_i32_0 = arith.constant 0 : i32
    %c0_i32_1 = arith.constant 0 : i32
    return %c0_i32, %c0_i32_0 : i32, i32
  }
  func.func @transform_10(%arg0: i32) -> (i32, i32, i32) {
    %c0_i32 = arith.constant 0 : i32
    %c0_i32_0 = arith.constant 0 : i32
    %c0_i32_1 = arith.constant 0 : i32
    %c0_i32_2 = arith.constant 0 : i32
    return %c0_i32, %c0_i32_0, %c0_i32_1 : i32, i32, i32
  }
  func.func @transform_11(%arg0: i32) -> (i32, i32) {
    %c0_i32 = arith.constant 0 : i32
    %c0_i32_0 = arith.constant 0 : i32
    %c0_i32_1 = arith.constant 0 : i32
    return %c0_i32, %c0_i32_0 : i32, i32
  }
  func.func @transform_12(%arg0: i32) -> (i32, i32, i32) {
    %c0_i32 = arith.constant 0 : i32
    %c0_i32_0 = arith.constant 0 : i32
    %c0_i32_1 = arith.constant 0 : i32
    %c0_i32_2 = arith.constant 0 : i32
    return %c0_i32, %c0_i32_0, %c0_i32_1 : i32, i32, i32
  }
  func.func @transform_13(%arg0: i32) -> (i32, i32, i32) {
    %c0_i32 = arith.constant 0 : i32
    %c0_i32_0 = arith.constant 0 : i32
    %c0_i32_1 = arith.constant 0 : i32
    %c0_i32_2 = arith.constant 0 : i32
    return %c0_i32, %c0_i32_0, %c0_i32_1 : i32, i32, i32
  }
  func.func @transform_14(%arg0: i32) -> (i32, i32, i32) {
    %c0_i32 = arith.constant 0 : i32
    %c0_i32_0 = arith.constant 0 : i32
    %c0_i32_1 = arith.constant 0 : i32
    %c0_i32_2 = arith.constant 0 : i32
    return %c0_i32, %c0_i32_0, %c0_i32_1 : i32, i32, i32
  }
  func.func @transform_15(%arg0: i32) -> (i32, i32) {
    %c0_i32 = arith.constant 0 : i32
    %c0_i32_0 = arith.constant 0 : i32
    %c0_i32_1 = arith.constant 0 : i32
    return %c0_i32, %c0_i32_0 : i32, i32
  }
  func.func @transform_16(%arg0: i32) -> (i32, i32) {
    %c0_i32 = arith.constant 0 : i32
    %c0_i32_0 = arith.constant 0 : i32
    %c0_i32_1 = arith.constant 0 : i32
    return %c0_i32, %c0_i32_0 : i32, i32
  }
  func.func @transform_17(%arg0: i32) -> (i32, i32) {
    %c0_i32 = arith.constant 0 : i32
    %c0_i32_0 = arith.constant 0 : i32
    %c0_i32_1 = arith.constant 0 : i32
    return %c0_i32, %c0_i32_0 : i32, i32
  }
  func.func @transform_18(%arg0: i32) -> (i32, i32) {
    %c0_i32 = arith.constant 0 : i32
    %c0_i32_0 = arith.constant 0 : i32
    %c0_i32_1 = arith.constant 0 : i32
    return %c0_i32, %c0_i32_0 : i32, i32
  }
  func.func @transform_19(%arg0: i32) -> (i32, i32, i32) {
    %c0_i32 = arith.constant 0 : i32
    %c0_i32_0 = arith.constant 0 : i32
    %c0_i32_1 = arith.constant 0 : i32
    return %arg0, %c0_i32, %c0_i32_0 : i32, i32, i32
  }
  func.func @transform_20(%arg0: i32) -> (i32, i32, i32) {
    %c0_i32 = arith.constant 0 : i32
    %c0_i32_0 = arith.constant 0 : i32
    %c0_i32_1 = arith.constant 0 : i32
    return %arg0, %c0_i32, %c0_i32_0 : i32, i32, i32
  }
  func.func @transform_21(%arg0: i32) -> (i32, i32, i32) {
    %c0_i32 = arith.constant 0 : i32
    %c0_i32_0 = arith.constant 0 : i32
    %c0_i32_1 = arith.constant 0 : i32
    return %arg0, %c0_i32, %c0_i32_0 : i32, i32, i32
  }
}

</mosaic_0001>

<bundles_post_ra>
// kernel: gaussian_diffusion_forward.17
= control target key start
LH: loop header
LB: loop body
LE: loop exit
PB: predicated region body
PF: predicated region fallthrough
CT: control target
= control target key end

     0   :  { %s2503_s0 = inlined_call_operand.vmem [shape: f32[1,1,256], index: 0, kind: input, shape index: {}]   ;;  %s2504_s1 = inlined_call_operand.vmem [shape: f32[1,1,256], index: 1, kind: input, shape index: {}]   ;;  %s2505_s2 = inlined_call_operand.vmem [shape: f32[1,1,256], index: 2, kind: input, shape index: {}]   ;;  %s2506_s3 = inlined_call_operand.vmem [shape: f32[1,16,256], index: 3, kind: input, shape index: {}]   ;;  %s2507_s4 = inlined_call_operand.vmem [shape: f32[1,16,256], index: 4, kind: input, shape index: {}]   ;;  %s2508_s5 = inlined_call_operand.vmem [shape: f32[1,32,256], index: 5, kind: input, shape index: {}]   ;;  %s2509_s6 = inlined_call_operand.vmem [shape: f32[1,1,256], index: 6, kind: input, shape index: {}]   ;;  %s2510_s7 = inlined_call_operand.vmem [shape: f32[1,2,32,256], index: 7, kind: input, shape index: {}]   ;;  %s2511_s8 = inlined_call_operand.vmem [shape: bf16[32,16], index: 8, kind: input, shape index: {}]   ;;  %s2512_s9 = inlined_call_operand.vmem [shape: f32[32,1], index: 9, kind: input, shape index: {}]   ;;  %s2513_s10 = inlined_call_operand.vmem [shape: bf16[2,64,32], index: 10, kind: input, shape index: {}]   ;;  %s2514_s11 = inlined_call_operand.vmem [shape: bf16[128,32], index: 11, kind: input, shape index: {}]   ;;  %s2515_s12 = inlined_call_operand.vmem [shape: f32[2,64,1], index: 12, kind: input, shape index: {}]   ;;  %s2516_s13 = inlined_call_operand.vmem [shape: bf16[2,64,32], index: 13, kind: input, shape index: {}]   ;;  %s2517_s14 = inlined_call_operand.vmem [shape: f32[2,64,1], index: 14, kind: input, shape index: {}]   ;;  %s2518_s15 = inlined_call_operand.vmem [shape: bf16[32,32], index: 15, kind: input, shape index: {}]   ;;  %s2519_s16 = inlined_call_operand.vmem [shape: f32[32,1], index: 16, kind: input, shape index: {}]   ;;  %s2520_s17 = inlined_call_operand.vmem [shape: bf16[16,32], index: 17, kind: input, shape index: {}]   ;;  %s2521_s18 = inlined_call_operand.vmem [shape: f32[16,1], index: 18, kind: input, shape index: {}]   ;;  %s2522_s19 = inlined_call_operand.vmem [shape: f32[1,16,256], index: 19, kind: output, shape index: {0}]   ;;  %s2523_s20 = inlined_call_operand.vmem [shape: f32[1,16,256], index: 20, kind: output, shape index: {1}]   ;;  %s2524_s21 = inlined_call_operand.hbm [shape: f32[1,1,1], index: 21, kind: output, shape index: {2}]  }
   0x1   :  { %2529 = sst [smem:[#allocation5_spill]] %s2503_s0 }
   0x2   :  { %2530 = sst [smem:[#allocation6_spill]] %s2504_s1 }
   0x3   :  { %2531 = sst [smem:[#allocation7_spill]] %s2505_s2 }
   0x4   :  { %2532 = sst [smem:[#allocation8_spill]] %s2506_s3 }
   0x5   :  { %2533 = sst [smem:[#allocation9_spill]] %s2507_s4 }
   0x6   :  { %2534 = sst [smem:[#allocation10_spill]] %s2508_s5 }
   0x7   :  { %2535 = sst [smem:[#allocation11_spill]] %s2524_s21 }
   0x8   :  { %v77_v0 = vlaneseq  ;;  %v1906_v1 = vmov 0   ;;  %s2536_s26 = sld [smem:[#allocation5_spill]]  ;;  %s2537_s28 = sld [smem:[#allocation8_spill]]  ;;  %v149_v13 = vld [vmem:[%s2512_s9] sm:$0xff]  ;;  %v150_v23 = vld [vmem:[%s2512_s9 + $0x8] sm:$0xff]  ;;  %v151_v28 = vld [vmem:[%s2512_s9 + $0x10] sm:$0xff] }
   0x9   :  { %222 = vmatprep.mubr.bf16.mxu0 %v1906_v1  ;;  %1751 = vset.pattern.permute.xlu0 %v1906_v1  ;;  %s2538_s5 = sld [smem:[#allocation9_spill]]  ;;  %s2539_s1 = sld [smem:[#allocation7_spill]]  ;;  %v152_v35 = vld [vmem:[%s2512_s9 + $0x18] sm:$0xff]  ;;  %v578_v38 = vld [vmem:[%s2515_s12] sm:$0xff]  ;;  %v579_v44 = vld [vmem:[%s2515_s12 + $0x8] sm:$0xff]  ;;  %vm183_vm0 = vcmask 130048  }
   0xa   :  { %v78_v3 = vshrl.u32 %v77_v0, 7  ;;  %1752 = vset.pattern.permute.xlu1 %v1906_v1  ;;  %374 = vmatprep.mubr.bf16.mxu1 %v1906_v1  ;;  %s2540_s25 = sld [smem:[#allocation6_spill]]  ;;  %v580_v46 = vld [vmem:[%s2515_s12 + $0x10] sm:$0xff]  ;;  %v1753_v47 = vld [vmem:[%s2511_s8] sm:$0xff]   ;;  %v581_v49 = vld [vmem:[%s2515_s12 + $0x18] sm:$0xff] }
   0xb   :  { %155 = vperm.xlu0 %1751, %v149_v13   ;;  %165 = vperm.xlu1 %1752, %v151_v28   ;;  %v582_v48 = vld [vmem:[%s2515_s12 + $0x20] sm:$0xff]  ;;  %v583_v50 = vld [vmem:[%s2515_s12 + $0x28] sm:$0xff]  ;;  %v584_v51 = vld [vmem:[%s2515_s12 + $0x30] sm:$0xff] }
   0xc   :  { %v2043_v10 = vsub.s32 1, %v78_v3  ;;  %v2048_v12 = vsub.s32 0, %v78_v3  ;;  %v1754_v52 = vld [vmem:[%s2511_s8 + $0x8] sm:$0xff]   ;;  %v585_v53 = vld [vmem:[%s2515_s12 + $0x38] sm:$0xff]  ;;  %v718_v54 = vld [vmem:[%s2517_s14] sm:$0xff] }
   0xd   :  { %v719_v55 = vld [vmem:[%s2517_s14 + $0x8] sm:$0xff]  ;;  %v720_v56 = vld [vmem:[%s2517_s14 + $0x10] sm:$0xff]  ;;  %v721_v57 = vld [vmem:[%s2517_s14 + $0x18] sm:$0xff] }
   0xe   :  { %v75_v2 = vld [vmem:[%s2536_s26] sm:$0x3]  ;;  %v68_v4 = vld [vmem:[%s2537_s28 + $0x8] sm:$0xff]  ;;  %v70_v5 = vld [vmem:[%s2537_s28 + $0x18] sm:$0xff] }
   0xf   :  { %v72_v6 = vld [vmem:[%s2538_s5 + $0x8] sm:$0xff]  ;;  %v91_v7 = vld [vmem:[%s2539_s1] sm:$0x3]  ;;  %v74_v9 = vld [vmem:[%s2538_s5 + $0x18] sm:$0xff]  ;;  %v84_v14 = vrot.slane %v75_v2, %v2043_v10  ;;  %v80_v19 = vrot.slane %v75_v2, %v2048_v12  ;;  %160 = vperm.xlu0 %1751, %v150_v23   ;;  %170 = vperm.xlu1 %1752, %v152_v35  }
  0x10   :  { %v111_v8 = vld [vmem:[%s2540_s25] sm:$0x3]  ;;  %v100_v15 = vrot.slane %v91_v7, %v2043_v10  ;;  %v69_v16 = vld [vmem:[%s2537_s28 + $0x10] sm:$0xff]  ;;  %v96_v21 = vrot.slane %v91_v7, %v2048_v12 }
  0x11   :  { %v67_v11 = vld [vmem:[%s2537_s28] sm:$0xff]  ;;  %v73_v18 = vld [vmem:[%s2538_s5 + $0x10] sm:$0xff]  ;;  %v120_v20 = vrot.slane %v111_v8, %v2043_v10  ;;  %v116_v22 = vrot.slane %v111_v8, %v2048_v12  ;;  %v88_v24 = vmul.f32 %v84_v14, %v68_v4  ;;  %v90_v25 = vmul.f32 %v84_v14, %v70_v5 }
  0x12   :  { %v71_v17 = vld [vmem:[%s2538_s5] sm:$0xff]  ;;  %v104_v26 = vmul.f32 %v100_v15, %v72_v6  ;;  %v106_v27 = vmul.f32 %v100_v15, %v74_v9  ;;  %v87_v29 = vmul.f32 %v80_v19, %v67_v11  ;;  %v89_v30 = vmul.f32 %v80_v19, %v69_v16 }
  0x13   :  { %v103_v31 = vmul.f32 %v96_v21, %v71_v17  ;;  %v105_v32 = vmul.f32 %v96_v21, %v73_v18  ;;  %588 = vperm.xlu0 %1751, %v578_v38   ;;  %593 = vperm.xlu1 %1752, %v579_v44   ;;  %v1641_v58 = vld [vmem:[%s2515_s12 + $0x40] sm:$0xff] }
  0x14   :  { %v108_v33 = vadd.f32 %v104_v26, %v88_v24  ;;  %v110_v34 = vadd.f32 %v106_v27, %v90_v25 }
  0x15   :  { %v107_v36 = vadd.f32 %v103_v31, %v87_v29  ;;  %v109_v37 = vadd.f32 %v105_v32, %v89_v30 }
  0x16   :  { %v124_v39 = vadd.f32 %v120_v20, %v108_v33  ;;  %v126_v40 = vadd.f32 %v120_v20, %v110_v34 }
  0x17   :  { %v123_v41 = vadd.f32 %v116_v22, %v107_v36  ;;  %v125_v42 = vadd.f32 %v116_v22, %v109_v37  ;;  %598 = vperm.xlu0 %1751, %v580_v46   ;;  %603 = vperm.xlu1 %1752, %v581_v49  }
  0x18   :  { %128 = vst [vmem:[%s2522_s19 + $0x8] sm:$0xff] %v124_v39  ;;  %130 = vst [vmem:[%s2522_s19 + $0x18] sm:$0xff] %v126_v40  ;;  %v148_v43 = vpack.c.bf16 %v126_v40, %v124_v39 }
  0x19   :  { %127 = vst [vmem:[%s2522_s19] sm:$0xff] %v123_v41  ;;  %129 = vst [vmem:[%s2522_s19 + $0x10] sm:$0xff] %v125_v42  ;;  %v147_v45 = vpack.c.bf16 %v125_v42, %v123_v41 }
  0x1a   :  { %190 = vmatprep.subr.bf16.mxu0 %v148_v43 }
  0x1b   :  { %191 = vmatpush1.bf16.msra.mxu0 %v147_v45  ;;  %608 = vperm.xlu0 %1751, %v582_v48  }
  0x1c   :  { %613 = vperm.xlu1 %1752, %v583_v50  }
  0x1e   :  { %1575 = vmatmul.mubr.msk.bf16.vlgmr.msra.gmra.mrb[0].mxu0 %vm183_vm0, %v1753_v47 }
  0x1f   :  { %232 = vmatprep.mubr.bf16.mxu0 %v1906_v1  ;;  %618 = vperm.xlu0 %1751, %v584_v51  }
  0x20   :  { %623 = vperm.xlu1 %1752, %v585_v53  }
  0x23   :  { %728 = vperm.xlu0 %1751, %v718_v54  }
  0x24   :  { %733 = vperm.xlu1 %1752, %v719_v55  }
  0x26   :  { %1576 = vmatmul.mubr.msk.bf16.gmra.mrb[4].mxu0 %vm183_vm0, %v1754_v52 }
  0x27   :  { %364 = vmatprep.mubr.bf16.mxu0 %v1906_v1  ;;  %738 = vperm.xlu0 %1751, %v720_v56  }
  0x28   :  { %27 = vsyncpa [#allocation3], 0  ;;  %743 = vperm.xlu1 %1752, %v721_v57   ;;  %s2541_s21 = sld [smem:[#allocation10_spill]]  ;;  %v1642_v62 = vld [vmem:[%s2515_s12 + $0x48] sm:$0xff]  ;;  %v1643_v2 = vld [vmem:[%s2515_s12 + $0x50] sm:$0xff]  ;;  %vm307_vm1 = vcmask 261120  }
  0x29   :  { %v1644_v7 = vld [vmem:[%s2515_s12 + $0x58] sm:$0xff]  ;;  %v1645_v11 = vld [vmem:[%s2515_s12 + $0x60] sm:$0xff]  ;;  %v1755_v14 = vld [vmem:[%s2514_s11 + $0x8] sm:$0xff]   ;;  %vm1549_vm2 = vcmask 0  }
  0x2a   :  { %v1646_v15 = vld [vmem:[%s2515_s12 + $0x68] sm:$0xff]  ;;  %v1647_v16 = vld [vmem:[%s2515_s12 + $0x70] sm:$0xff]  ;;  %v1648_v17 = vld [vmem:[%s2515_s12 + $0x78] sm:$0xff] }
  0x2b   :  { %1041 = vperm.xlu0 %1751, %v1641_v58   ;;  %v722_v18 = vld [vmem:[%s2517_s14 + $0x20] sm:$0xff]  ;;  %v1756_v19 = vld [vmem:[%s2514_s11 + $0x10] sm:$0xff]   ;;  %v723_v20 = vld [vmem:[%s2517_s14 + $0x28] sm:$0xff] }
  0x2c   :  { %1046 = vperm.xlu1 %1752, %v1642_v62   ;;  %v1669_v21 = vld [vmem:[%s2517_s14 + $0x60] sm:$0xff]  ;;  %v1670_v22 = vld [vmem:[%s2517_s14 + $0x68] sm:$0xff]  ;;  %v724_v23 = vld [vmem:[%s2517_s14 + $0x30] sm:$0xff] }
  0x2d   :  { %v1757_v24 = vld [vmem:[%s2514_s11 + $0x18] sm:$0xff]   ;;  %v1671_v26 = vld [vmem:[%s2517_s14 + $0x70] sm:$0xff]  ;;  %v1338_v28 = vld [vmem:[%s2519_s16] sm:$0xff] }
  0x2e   :  { %v132_v59 = vld [vmem:[%s2541_s21 + $0x8] sm:$0xff]  ;;  %v134_v60 = vld [vmem:[%s2541_s21 + $0x18] sm:$0xff]  ;;  %v131_v61 = vld [vmem:[%s2541_s21] sm:$0xff] }
  0x2f   :  { %v140_v63 = vpack.c.bf16 %v134_v60, %v132_v59  ;;  %v133_v0 = vld [vmem:[%s2541_s21 + $0x10] sm:$0xff]  ;;  %v136_v4 = vld [vmem:[%s2541_s21 + $0x28] sm:$0xff]  ;;  %v138_v5 = vld [vmem:[%s2541_s21 + $0x38] sm:$0xff]  ;;  %1051 = vperm.xlu0 %1751, %v1643_v2  }
  0x30   :  { %v139_v3 = vpack.c.bf16 %v133_v0, %v131_v61  ;;  %v135_v6 = vld [vmem:[%s2541_s21 + $0x20] sm:$0xff]  ;;  %v142_v8 = vpack.c.bf16 %v138_v5, %v136_v4  ;;  %v137_v9 = vld [vmem:[%s2541_s21 + $0x30] sm:$0xff]  ;;  %1056 = vperm.xlu1 %1752, %v1644_v7   ;;  %v725_v25 = vld [vmem:[%s2517_s14 + $0x38] sm:$0xff] }
  0x31   :  { %1687 = vmatprep.subr.bf16.mxu1 %v140_v63  ;;  %332 = vmatprep.subr.bf16.mxu0 %v140_v63  ;;  %v141_v13 = vpack.c.bf16 %v137_v9, %v135_v6  ;;  %v1672_v27 = vld [vmem:[%s2517_s14 + $0x78] sm:$0xff]  ;;  %v1758_v29 = vld [vmem:[%s2514_s11 + $0x20] sm:$0xff]   ;;  %v1339_v30 = vld [vmem:[%s2519_s16 + $0x8] sm:$0xff] }
  0x32   :  { %1689 = vmatpush1.bf16.msra.mxu1 %v139_v3  ;;  %333 = vmatpush1.bf16.msra.mxu0 %v139_v3  ;;  %v1340_v31 = vld [vmem:[%s2519_s16 + $0x10] sm:$0xff]  ;;  %v1341_v32 = vld [vmem:[%s2519_s16 + $0x18] sm:$0xff]  ;;  %v1445_v33 = vld [vmem:[%s2521_s18] sm:$0xff] }
  0x33   :  { %1688 = vmatprep.subr.bf16.mxu1 %v142_v8  ;;  %334 = vmatprep.subr.bf16.mxu0 %v142_v8  ;;  %v1446_v34 = vld [vmem:[%s2521_s18 + $0x8] sm:$0xff]  ;;  %v1760_v36 = vld [vmem:[%s2514_s11 + $0x30] sm:$0xff]   ;;  %v1761_v37 = vld [vmem:[%s2514_s11 + $0x38] sm:$0xff]  }
  0x34   :  { %1061 = vperm.xlu0 %1751, %v1645_v11   ;;  %1066 = vperm.xlu1 %1752, %v1646_v15   ;;  %v1759_v35 = vld [vmem:[%s2514_s11 + $0x28] sm:$0xff]   ;;  %v1762_v38 = vld [vmem:[%s2514_s11] sm:$0xff]   ;;  %v447_v50 = vld [vmem:[%s2510_s7 + $0x10] sm:$0xff] }
  0x35   :  { %v446_v53 = vld [vmem:[%s2510_s7 + $0x8] sm:$0xff]  ;;  %v448_v55 = vld [vmem:[%s2510_s7 + $0x18] sm:$0xff]  ;;  %v445_v56 = vld [vmem:[%s2510_s7] sm:$0xff] }
  0x36   :  { %1690 = vmatpush1.bf16.msra.mxu1 %v141_v13  ;;  %335 = vmatpush1.bf16.msra.mxu0 %v141_v13  ;;  %v451_v11 = vld [vmem:[%s2510_s7 + $0x30] sm:$0xff]  ;;  %v450_v15 = vld [vmem:[%s2510_s7 + $0x28] sm:$0xff] }
  0x38   :  { %1071 = vperm.xlu0 %1751, %v1647_v16   ;;  %1076 = vperm.xlu1 %1752, %v1648_v17   ;;  %v452_v17 = vld [vmem:[%s2510_s7 + $0x38] sm:$0xff] }
  0x39   :  { %1586 = vmatmul.mubr.msk.bf16.vlgmr.msra.gmra.mrb[0].mxu1 %vm307_vm1, %v1755_v14  ;;  %1585 = vmatmul.mubr.msk.bf16.vlgmr.msra.gmra.mrb[8].mxu0 %vm307_vm1, %v1762_v38 }
  0x3a   :  { %384 = vmatprep.mubr.bf16.mxu1 %v1906_v1  ;;  %830 = vmatprep.mubr.bf16.mxu0 %v1906_v1 }
  0x3c   :  { %748 = vperm.xlu0 %1751, %v722_v18   ;;  %753 = vperm.xlu1 %1752, %v723_v20   ;;  %v449_v18 = vld [vmem:[%s2510_s7 + $0x20] sm:$0xff] }
  0x40   :  { %1199 = vperm.xlu0 %1751, %v1669_v21   ;;  %1204 = vperm.xlu1 %1752, %v1670_v22  }
  0x41   :  { %1587 = vmatmul.mubr.msk.bf16.gmra.mrb[4].mxu1 %vm307_vm1, %v1756_v19 }
  0x42   :  { %394 = vmatprep.mubr.bf16.mxu1 %v1906_v1 }
  0x44   :  { %758 = vperm.xlu0 %1751, %v724_v23   ;;  %763 = vperm.xlu1 %1752, %v725_v25  }
  0x48   :  { %1209 = vperm.xlu0 %1751, %v1671_v26   ;;  %1214 = vperm.xlu1 %1752, %v1672_v27   ;;  %v1763_v26 = vld [vmem:[%s2513_s10] sm:$0xff]   ;;  %v1764_v27 = vld [vmem:[%s2513_s10 + $0x8] sm:$0xff]  }
  0x49   :  { %1588 = vmatmul.mubr.msk.bf16.gmra.mrb[8].mxu1 %vm307_vm1, %v1757_v24 }
  0x4a   :  { %404 = vmatprep.mubr.bf16.mxu1 %v1906_v1 }
  0x4c   :  { %1344 = vperm.xlu0 %1751, %v1338_v28   ;;  %1349 = vperm.xlu1 %1752, %v1339_v30   ;;  %v1765_v28 = vld [vmem:[%s2513_s10 + $0x10] sm:$0xff]  }
  0x50   :  { %1354 = vperm.xlu0 %1751, %v1340_v31   ;;  %1359 = vperm.xlu1 %1752, %v1341_v32  }
  0x51   :  { %1589 = vmatmul.mubr.msk.bf16.gmra.mrb[12].mxu1 %vm307_vm1, %v1758_v29  ;;  %v1766_v29 = vld [vmem:[%s2513_s10 + $0x18] sm:$0xff]  }
  0x52   :  { %414 = vmatprep.mubr.bf16.mxu1 %v1906_v1 }
  0x54   :  { %1449 = vperm.xlu0 %1751, %v1445_v33   ;;  %1454 = vperm.xlu1 %1752, %v1446_v34  }
  0x59   :  { %1590 = vmatmul.mubr.msk.bf16.gmra.mrb[16].mxu1 %vm307_vm1, %v1759_v35 }
  0x5a   :  { %424 = vmatprep.mubr.bf16.mxu1 %v1906_v1 }
  0x61   :  { %1591 = vmatmul.mubr.msk.bf16.gmra.mrb[20].mxu1 %vm307_vm1, %v1760_v36 }
  0x62   :  { %434 = vmatprep.mubr.bf16.mxu1 %v1906_v1 }
  0x69   :  { %1592 = vmatmul.mubr.msk.bf16.gmra.mrb[24].mxu1 %vm307_vm1, %v1761_v37 }
  0x6a   :  { %537 = vmatprep.mubr.bf16.mxu1 %v1906_v1 }
  0x8a   :  { %v156_v39 = vpop.permute.xlu0 %155  ;;  %v166_v48 = vpop.permute.xlu1 %165 }
  0x8e   :  { %v161_v43 = vpop.permute.xlu0 %160  ;;  %v171_v2 = vpop.permute.xlu1 %170 }
  0x92   :  { %v589_v37 = vpop.permute.xlu0 %588 }
  0xf1   :  { %v224_v40 = vpop.f32.mrb[0].mxu0 }
  0xf2   :  { %v2265_v41 = vadd.f32 %v224_v40, %v156_v39  ;;  %v226_v42 = vpop.f32.mrb[1].mxu0 }
  0xf3   :  { %v2267_v44 = vadd.f32 %v226_v42, %v156_v39  ;;  %v228_v45 = vpop.f32.mrb[2].mxu0 }
  0xf4   :  { %v2269_v46 = vadd.f32 %v228_v45, %v161_v43  ;;  %v230_v47 = vpop.f32.mrb[3].mxu0  ;;  %v243_v52 = vmax.f32 %v2265_v41, 0.0  ;;  %v594_v45 = vpop.permute.xlu1 %593  ;;  %v1619_v41 = vld [vmem:[%s2510_s7 + $0x50] sm:$0xff] }
  0xf5   :  { %v244_v49 = vmax.f32 %v2267_v44, 0.0  ;;  %v2275_v51 = vadd.f32 %v230_v47, %v161_v43  ;;  %v1618_v44 = vld [vmem:[%s2510_s7 + $0x48] sm:$0xff] }
  0xf6   :  { %v245_v54 = vmax.f32 %v2269_v46, 0.0  ;;  %v453_v62 = vadd.f32 %v445_v56, %v243_v52  ;;  %v1620_v46 = vld [vmem:[%s2510_s7 + $0x58] sm:$0xff] }
  0xf7   :  { %v246_v57 = vmax.f32 %v2275_v51, 0.0  ;;  %v454_v59 = vadd.f32 %v446_v53, %v244_v49 }
  0xf8   :  { %v455_v58 = vadd.f32 %v447_v50, %v245_v54 }
  0xf9   :  { %v456_v60 = vadd.f32 %v448_v55, %v246_v57  ;;  %v234_v61 = vpop.f32.mrb[4].mxu0 }
  0xfa   :  { %v2297_v63 = vadd.f32 %v234_v61, %v166_v48  ;;  %v236_v0 = vpop.f32.mrb[5].mxu0  ;;  %v461_v6 = vpack.c.bf16 %v455_v58, %v453_v62 }
  0xfb   :  { %v2299_v3 = vadd.f32 %v236_v0, %v166_v48  ;;  %v238_v4 = vpop.f32.mrb[6].mxu0  ;;  %v462_v5 = vpack.c.bf16 %v456_v60, %v454_v59  ;;  %v599_v59 = vpop.permute.xlu0 %598 }
  0xfc   :  { %v2301_v7 = vadd.f32 %v238_v4, %v171_v2  ;;  %v240_v8 = vpop.f32.mrb[7].mxu0  ;;  %v247_v14 = vmax.f32 %v2297_v63, 0.0  ;;  %v1623_v63 = vld [vmem:[%s2510_s7 + $0x70] sm:$0xff] }
  0xfd   :  { %v248_v9 = vmax.f32 %v2299_v3, 0.0  ;;  %v2307_v13 = vadd.f32 %v240_v8, %v171_v2  ;;  %505 = vmatprep.subr.bf16.mxu1 %v462_v5  ;;  %v604_v2 = vpop.permute.xlu1 %603  ;;  %v1622_v3 = vld [vmem:[%s2510_s7 + $0x68] sm:$0xff] }
  0xfe   :  { %v249_v16 = vmax.f32 %v2301_v7, 0.0  ;;  %506 = vmatpush1.bf16.msra.mxu1 %v461_v6  ;;  %v457_v23 = vadd.f32 %v449_v18, %v247_v14  ;;  %v1624_v7 = vld [vmem:[%s2510_s7 + $0x78] sm:$0xff] }
  0xff   :  { %v250_v19 = vmax.f32 %v2307_v13, 0.0  ;;  %v458_v21 = vadd.f32 %v450_v15, %v248_v9  ;;  %v1769_v13 = vld [vmem:[%s2513_s10 + $0x20] sm:$0xff]  }
 0x100   :  { %v459_v20 = vadd.f32 %v451_v11, %v249_v16 }
 0x101   :  { %v460_v22 = vadd.f32 %v452_v17, %v250_v19 }
 0x102   :  { %v463_v25 = vpack.c.bf16 %v459_v20, %v457_v23 }
 0x103   :  { %v464_v24 = vpack.c.bf16 %v460_v22, %v458_v21  ;;  %v609_v21 = vpop.permute.xlu0 %608 }
 0x105   :  { %507 = vmatprep.subr.bf16.mxu1 %v464_v24 }
 0x106   :  { %508 = vmatpush1.bf16.msra.mxu1 %v463_v25 }
 0x109   :  { %1597 = vmatmul.mubr.msk.bf16.vlgmr.msra.gmra.mrb[28].mxu1 %vm307_vm1, %v1763_v26 }
 0x10a   :  { %547 = vmatprep.mubr.bf16.mxu1 %v1906_v1 }
 0x10c   :  { %v366_v30 = vpop.f32.mrb[8].mxu0 }
 0x10d   :  { %v368_v31 = vpop.f32.mrb[9].mxu0 }
 0x10e   :  { %v370_v32 = vpop.f32.mrb[10].mxu0 }
 0x10f   :  { %v372_v33 = vpop.f32.mrb[11].mxu0 }
 0x111   :  { %1598 = vmatmul.mubr.msk.bf16.gmra.mrb[0].mxu1 %vm307_vm1, %v1764_v27 }
 0x112   :  { %557 = vmatprep.mubr.bf16.mxu1 %v1906_v1 }
 0x119   :  { %1599 = vmatmul.mubr.msk.bf16.gmra.mrb[4].mxu1 %vm307_vm1, %v1765_v28 }
 0x11a   :  { %567 = vmatprep.mubr.bf16.mxu1 %v1906_v1 }
 0x121   :  { %1600 = vmatmul.mubr.msk.bf16.gmra.mrb[8].mxu1 %vm307_vm1, %v1766_v29 }
 0x122   :  { %989 = vmatprep.mubr.bf16.mxu1 %v1906_v1 }
 0x1dc   :  { %v539_v34 = vpop.f32.mrb[28].mxu1 }
 0x1dd   :  { %v540_v35 = vadd.f32 %v539_v34, %v366_v30  ;;  %v541_v36 = vpop.f32.mrb[29].mxu1 }
 0x1de   :  { %v542_v38 = vadd.f32 %v541_v36, %v368_v31  ;;  %v543_v39 = vpop.f32.mrb[30].mxu1 }
 0x1df   :  { %v626_v40 = vadd.f32 %v589_v37, %v540_v35  ;;  %v544_v42 = vadd.f32 %v543_v39, %v370_v32  ;;  %v545_v43 = vpop.f32.mrb[31].mxu1 }
 0x1e0   :  { %v627_v47 = vadd.f32 %v589_v37, %v542_v38  ;;  %v546_v48 = vadd.f32 %v545_v43, %v372_v33  ;;  %v614_v33 = vpop.permute.xlu1 %613 }
 0x1e1   :  { %v1601_v50 = vmul.f32 -1.442695, %v626_v40  ;;  %v628_v53 = vadd.f32 %v594_v45, %v544_v42 }
 0x1e2   :  { %v1602_v55 = vmul.f32 -1.442695, %v627_v47  ;;  %v629_v56 = vadd.f32 %v594_v45, %v546_v48 }
 0x1e3   :  { %1782 = vpow2.f32 %v1601_v50  ;;  %v1603_v58 = vmul.f32 -1.442695, %v628_v53  ;;  %v619_v50 = vpop.permute.xlu0 %618 }
 0x1e4   :  { %1784 = vpow2.f32 %v1602_v55  ;;  %v1604_v60 = vmul.f32 -1.442695, %v629_v56  ;;  %v549_v61 = vpop.f32.mrb[0].mxu1 }
 0x1e5   :  { %1786 = vpow2.f32 %v1603_v58  ;;  %v630_v62 = vadd.f32 %v599_v59, %v549_v61  ;;  %v551_v0 = vpop.f32.mrb[1].mxu1  ;;  %v624_v61 = vpop.permute.xlu1 %623 }
 0x1e6   :  { %1788 = vpow2.f32 %v1604_v60  ;;  %v631_v4 = vadd.f32 %v599_v59, %v551_v0  ;;  %v553_v5 = vpop.f32.mrb[2].mxu1 }
 0x1e7   :  { %v1605_v6 = vmul.f32 -1.442695, %v630_v62  ;;  %v632_v8 = vadd.f32 %v604_v2, %v553_v5  ;;  %v555_v11 = vpop.f32.mrb[3].mxu1 }
 0x1e8   :  { %v1606_v15 = vmul.f32 -1.442695, %v631_v4  ;;  %v633_v17 = vadd.f32 %v604_v2, %v555_v11 }
 0x1e9   :  { %1790 = vpow2.f32 %v1605_v6  ;;  %v1607_v18 = vmul.f32 -1.442695, %v632_v8 }
 0x1ea   :  { %1792 = vpow2.f32 %v1606_v15  ;;  %v1608_v20 = vmul.f32 -1.442695, %v633_v17 }
 0x1eb   :  { %1794 = vpow2.f32 %v1607_v18 }
 0x1ec   :  { %1796 = vpow2.f32 %v1608_v20  ;;  %v559_v22 = vpop.f32.mrb[4].mxu1 }
 0x1ed   :  { %v1783_v23 = vpop.eup %1782  ;;  %v634_v24 = vadd.f32 %v609_v21, %v559_v22  ;;  %v561_v25 = vpop.f32.mrb[5].mxu1 }
 0x1ee   :  { %v1785_v26 = vpop.eup %1784  ;;  %v666_v27 = vadd.f32 1.0, %v1783_v23  ;;  %v563_v28 = vpop.f32.mrb[6].mxu1  ;;  %v635_v35 = vadd.f32 %v609_v21, %v561_v25 }
 0x1ef   :  { %v1787_v29 = vpop.eup %1786  ;;  %v667_v30 = vadd.f32 1.0, %v1785_v26  ;;  %1798 = vtanh.f32 %v634_v24  ;;  %v565_v31 = vpop.f32.mrb[7].mxu1  ;;  %v636_v37 = vadd.f32 %v614_v33, %v563_v28 }
 0x1f0   :  { %v1789_v32 = vpop.eup %1788  ;;  %1800 = vrcp.f32 %v666_v27  ;;  %v668_v34 = vadd.f32 1.0, %v1787_v29  ;;  %v637_v55 = vadd.f32 %v614_v33, %v565_v31 }
 0x1f1   :  { %1802 = vrcp.f32 %v667_v30  ;;  %v669_v36 = vadd.f32 1.0, %v1789_v32 }
 0x1f2   :  { %1804 = vrcp.f32 %v668_v34 }
 0x1f3   :  { %v1791_v38 = vpop.eup %1790  ;;  %1806 = vrcp.f32 %v669_v36 }
 0x1f4   :  { %v1793_v39 = vpop.eup %1792  ;;  %v670_v40 = vadd.f32 1.0, %v1791_v38  ;;  %1808 = vtanh.f32 %v635_v35  ;;  %v569_v42 = vpop.f32.mrb[8].mxu1 }
 0x1f5   :  { %v1795_v43 = vpop.eup %1794  ;;  %v671_v45 = vadd.f32 1.0, %v1793_v39  ;;  %1810 = vtanh.f32 %v636_v37  ;;  %v571_v47 = vpop.f32.mrb[9].mxu1  ;;  %v638_v59 = vadd.f32 %v619_v50, %v569_v42  ;;  %v1768_v42 = vld [vmem:[%s2516_s13 + $0x8] sm:$0xff]  }
 0x1f6   :  { %v1797_v48 = vpop.eup %1796  ;;  %1812 = vrcp.f32 %v670_v40  ;;  %v672_v53 = vadd.f32 1.0, %v1795_v43  ;;  %v573_v56 = vpop.f32.mrb[10].mxu1  ;;  %v639_v62 = vadd.f32 %v619_v50, %v571_v47  ;;  %v1767_v40 = vld [vmem:[%s2516_s13] sm:$0xff]  }
 0x1f7   :  { %1814 = vrcp.f32 %v671_v45  ;;  %v673_v58 = vadd.f32 1.0, %v1797_v48  ;;  %v575_v60 = vpop.f32.mrb[11].mxu1  ;;  %v640_v2 = vadd.f32 %v624_v61, %v573_v56  ;;  %v729_v43 = vpop.permute.xlu0 %728 }
 0x1f8   :  { %1816 = vrcp.f32 %v672_v53  ;;  %v641_v5 = vadd.f32 %v624_v61, %v575_v60  ;;  %v734_v50 = vpop.permute.xlu1 %733 }
 0x1f9   :  { %v1799_v0 = vpop.eup %1798  ;;  %1818 = vrcp.f32 %v673_v58 }
 0x1fa   :  { %v1801_v4 = vpop.eup %1800  ;;  %1820 = vtanh.f32 %v637_v55 }
 0x1fb   :  { %v1803_v6 = vpop.eup %1802  ;;  %1822 = vtanh.f32 %v638_v59  ;;  %v698_v8 = vmul.f32 %v1801_v4, %v1799_v0 }
 0x1fc   :  { %v1805_v11 = vpop.eup %1804  ;;  %1824 = vtanh.f32 %v639_v62 }
 0x1fd   :  { %v1807_v15 = vpop.eup %1806  ;;  %1826 = vtanh.f32 %v640_v2  ;;  %v1617_v2 = vld [vmem:[%s2510_s7 + $0x40] sm:$0xff] }
 0x1fe   :  { %v1809_v17 = vpop.eup %1808  ;;  %1828 = vtanh.f32 %v641_v5 }
 0x1ff   :  { %v1811_v18 = vpop.eup %1810  ;;  %v699_v20 = vmul.f32 %v1809_v17, %v1803_v6 }
 0x200   :  { %v1813_v21 = vpop.eup %1812  ;;  %v700_v22 = vmul.f32 %v1811_v18, %v1805_v11  ;;  %v744_v18 = vpop.permute.xlu1 %743 }
 0x201   :  { %v1815_v23 = vpop.eup %1814 }
 0x202   :  { %v1817_v24 = vpop.eup %1816  ;;  %v706_v25 = vpack.c.bf16 %v700_v22, %v698_v8 }
 0x203   :  { %v1819_v26 = vpop.eup %1818 }
 0x204   :  { %v1821_v27 = vpop.eup %1820 }
 0x205   :  { %v1823_v28 = vpop.eup %1822  ;;  %v701_v29 = vmul.f32 %v1821_v27, %v1807_v15 }
 0x206   :  { %v1825_v30 = vpop.eup %1824  ;;  %v702_v31 = vmul.f32 %v1823_v28, %v1813_v21 }
 0x207   :  { %v1827_v32 = vpop.eup %1826  ;;  %v707_v33 = vpack.c.bf16 %v701_v29, %v699_v20  ;;  %v703_v34 = vmul.f32 %v1825_v30, %v1815_v23 }
 0x208   :  { %v1829_v35 = vpop.eup %1828  ;;  %v704_v36 = vmul.f32 %v1827_v32, %v1817_v24 }
 0x209   :  { %798 = vmatprep.subr.bf16.mxu0 %v707_v33  ;;  %v705_v37 = vmul.f32 %v1829_v35, %v1819_v26 }
 0x20a   :  { %799 = vmatpush1.bf16.msra.mxu0 %v706_v25  ;;  %v708_v38 = vpack.c.bf16 %v704_v36, %v702_v31  ;;  %v1621_v31 = vld [vmem:[%s2510_s7 + $0x60] sm:$0xff] }
 0x20b   :  { %v709_v39 = vpack.c.bf16 %v705_v37, %v703_v34 }
 0x20d   :  { %800 = vmatprep.subr.bf16.mxu0 %v709_v39  ;;  %v1771_v39 = vld [vmem:[%s2513_s10 + $0x30] sm:$0xff]  }
 0x20e   :  { %801 = vmatpush1.bf16.msra.mxu0 %v708_v38 }
 0x211   :  { %1613 = vmatmul.mubr.msk.bf16.vlgmr.msra.gmra.mrb[12].mxu0 %vm307_vm1, %v1767_v40  ;;  %v1772_v40 = vld [vmem:[%s2513_s10 + $0x38] sm:$0xff]  }
 0x212   :  { %840 = vmatprep.mubr.bf16.mxu0 %v1906_v1 }
 0x219   :  { %1614 = vmatmul.mubr.msk.bf16.gmra.mrb[16].mxu0 %vm307_vm1, %v1768_v42  ;;  %v1773_v42 = vld [vmem:[%s2516_s13 + $0x10] sm:$0xff]  }
 0x21a   :  { %850 = vmatprep.mubr.bf16.mxu0 %v1906_v1 }
 0x221   :  { %1615 = vmatmul.mubr.msk.bf16.gmra.mrb[20].mxu0 %vm307_vm1, %v1773_v42 }
 0x222   :  { %860 = vmatprep.mubr.bf16.mxu0 %v1906_v1 }
 0x2e4   :  { %v832_v45 = vpop.f32.mrb[12].mxu0 }
 0x2e5   :  { %v833_v47 = vadd.f32 %v832_v45, %v729_v43  ;;  %v834_v48 = vpop.f32.mrb[13].mxu0 }
 0x2e6   :  { %v835_v53 = vadd.f32 %v834_v48, %v729_v43  ;;  %v836_v55 = vpop.f32.mrb[14].mxu0  ;;  %v1774_v43 = vld [vmem:[%s2516_s13 + $0x18] sm:$0xff]  }
 0x2e7   :  { %v871_v56 = vadd.f32 %v833_v47, %v243_v52  ;;  %v837_v58 = vadd.f32 %v836_v55, %v734_v50  ;;  %v838_v59 = vpop.f32.mrb[15].mxu0  ;;  %1616 = vmatmul.mubr.msk.bf16.gmra.mrb[24].mxu0 %vm307_vm1, %v1774_v43 }
 0x2e8   :  { %v872_v60 = vadd.f32 %v835_v53, %v244_v49  ;;  %v839_v61 = vadd.f32 %v838_v59, %v734_v50  ;;  %1281 = vmatprep.mubr.bf16.mxu0 %v1906_v1  ;;  %v1047_v53 = vpop.permute.xlu1 %1046 }
 0x2e9   :  { %v879_v62 = vmul.f32 0.70710677, %v871_v56  ;;  %v873_v0 = vadd.f32 %v837_v58, %v245_v54  ;;  %v739_v54 = vpop.permute.xlu0 %738 }
 0x2ea   :  { %v880_v4 = vmul.f32 0.70710677, %v872_v60  ;;  %v874_v52 = vadd.f32 %v839_v61, %v246_v57 }
 0x2eb   :  { %v881_v49 = vmul.f32 0.70710677, %v873_v0  ;;  %v904_v8 = vadd.f32 %v1617_v2, %v879_v62 }
 0x2ec   :  { %v882_v5 = vmul.f32 0.70710677, %v874_v52  ;;  %v842_v6 = vpop.f32.mrb[16].mxu0  ;;  %v905_v20 = vadd.f32 %v1618_v44, %v880_v4 }
 0x2ed   :  { %v906_v11 = vadd.f32 %v1619_v41, %v881_v49  ;;  %v843_v15 = vadd.f32 %v842_v6, %v739_v54  ;;  %v844_v17 = vpop.f32.mrb[17].mxu0  ;;  %v1042_v45 = vpop.permute.xlu0 %1041 }
 0x2ee   :  { %v907_v51 = vadd.f32 %v1620_v46, %v882_v5  ;;  %v845_v57 = vadd.f32 %v844_v17, %v739_v54  ;;  %v846_v21 = vpop.f32.mrb[18].mxu0  ;;  %v1057_v49 = vpop.permute.xlu1 %1056 }
 0x2ef   :  { %v912_v22 = vpack.c.bf16 %v906_v11, %v904_v8  ;;  %v875_v23 = vadd.f32 %v843_v15, %v247_v14  ;;  %v847_v24 = vadd.f32 %v846_v21, %v744_v18  ;;  %v848_v25 = vpop.f32.mrb[19].mxu0 }
 0x2f0   :  { %v876_v26 = vadd.f32 %v845_v57, %v248_v9  ;;  %v849_v27 = vadd.f32 %v848_v25, %v744_v18  ;;  %v913_v28 = vpack.c.bf16 %v907_v51, %v905_v20 }
 0x2f1   :  { %v883_v29 = vmul.f32 0.70710677, %v875_v23  ;;  %v877_v30 = vadd.f32 %v847_v24, %v249_v16  ;;  %v1052_v4 = vpop.permute.xlu0 %1051 }
 0x2f2   :  { %v884_v32 = vmul.f32 0.70710677, %v876_v26  ;;  %v878_v14 = vadd.f32 %v849_v27, %v250_v19  ;;  %957 = vmatprep.subr.bf16.mxu1 %v913_v28  ;;  %v1770_v19 = vld [vmem:[%s2513_s10 + $0x28] sm:$0xff]  }
 0x2f3   :  { %v885_v9 = vmul.f32 0.70710677, %v877_v30  ;;  %958 = vmatpush1.bf16.msra.mxu1 %v912_v22  ;;  %v908_v33 = vadd.f32 %v1621_v31, %v883_v29  ;;  %v1067_v30 = vpop.permute.xlu1 %1066 }
 0x2f4   :  { %v886_v16 = vmul.f32 0.70710677, %v878_v14  ;;  %v909_v35 = vadd.f32 %v1622_v3, %v884_v32 }
 0x2f5   :  { %v910_v34 = vadd.f32 %v1623_v63, %v885_v9  ;;  %v1062_v23 = vpop.permute.xlu0 %1061 }
 0x2f6   :  { %v911_v36 = vadd.f32 %v1624_v7, %v886_v16 }
 0x2f7   :  { %v914_v37 = vpack.c.bf16 %v910_v34, %v908_v33 }
 0x2f8   :  { %v915_v38 = vpack.c.bf16 %v911_v36, %v909_v35 }
 0x2f9   :  { %v1072_v35 = vpop.permute.xlu0 %1071 }
 0x2fa   :  { %959 = vmatprep.subr.bf16.mxu1 %v915_v38 }
 0x2fb   :  { %960 = vmatpush1.bf16.msra.mxu1 %v914_v37 }
 0x2fe   :  { %1637 = vmatmul.mubr.msk.bf16.vlgmr.msra.gmra.mrb[12].mxu1 %vm307_vm1, %v1769_v13 }
 0x2ff   :  { %999 = vmatprep.mubr.bf16.mxu1 %v1906_v1 }
 0x306   :  { %1638 = vmatmul.mubr.msk.bf16.gmra.mrb[16].mxu1 %vm307_vm1, %v1770_v19 }
 0x307   :  { %1009 = vmatprep.mubr.bf16.mxu1 %v1906_v1 }
 0x30e   :  { %1639 = vmatmul.mubr.msk.bf16.gmra.mrb[20].mxu1 %vm307_vm1, %v1771_v39 }
 0x30f   :  { %1019 = vmatprep.mubr.bf16.mxu1 %v1906_v1 }
 0x316   :  { %1640 = vmatmul.mubr.msk.bf16.gmra.mrb[24].mxu1 %vm307_vm1, %v1772_v40  ;;  %v1077_v40 = vpop.permute.xlu1 %1076 }
 0x3d1   :  { %v991_v47 = vpop.f32.mrb[12].mxu1 }
 0x3d2   :  { %v1079_v48 = vadd.f32 %v1042_v45, %v991_v47  ;;  %v993_v50 = vpop.f32.mrb[13].mxu1 }
 0x3d3   :  { %v1080_v55 = vadd.f32 %v1042_v45, %v993_v50  ;;  %v995_v56 = vpop.f32.mrb[14].mxu1 }
 0x3d4   :  { %v1649_v58 = vmul.f32 -1.442695, %v1079_v48  ;;  %v1081_v59 = vadd.f32 %v1047_v53, %v995_v56  ;;  %v997_v60 = vpop.f32.mrb[15].mxu1 }
 0x3d5   :  { %v1650_v61 = vmul.f32 -1.442695, %v1080_v55  ;;  %v1082_v62 = vadd.f32 %v1047_v53, %v997_v60 }
 0x3d6   :  { %1830 = vpow2.f32 %v1649_v58  ;;  %v1651_v0 = vmul.f32 -1.442695, %v1081_v59 }
 0x3d7   :  { %1832 = vpow2.f32 %v1650_v61  ;;  %v1652_v2 = vmul.f32 -1.442695, %v1082_v62 }
 0x3d8   :  { %1834 = vpow2.f32 %v1651_v0 }
 0x3d9   :  { %1836 = vpow2.f32 %v1652_v2  ;;  %v1001_v41 = vpop.f32.mrb[16].mxu1 }
 0x3da   :  { %v1083_v52 = vadd.f32 %v1052_v4, %v1001_v41  ;;  %v1003_v44 = vpop.f32.mrb[17].mxu1 }
 0x3db   :  { %v1084_v46 = vadd.f32 %v1052_v4, %v1003_v44  ;;  %v1005_v54 = vpop.f32.mrb[18].mxu1 }
 0x3dc   :  { %v1653_v5 = vmul.f32 -1.442695, %v1083_v52  ;;  %v1085_v6 = vadd.f32 %v1057_v49, %v1005_v54  ;;  %v1007_v8 = vpop.f32.mrb[19].mxu1 }
 0x3dd   :  { %v1654_v11 = vmul.f32 -1.442695, %v1084_v46  ;;  %v1086_v15 = vadd.f32 %v1057_v49, %v1007_v8 }
 0x3de   :  { %1838 = vpow2.f32 %v1653_v5  ;;  %v1655_v17 = vmul.f32 -1.442695, %v1085_v6 }
 0x3df   :  { %1840 = vpow2.f32 %v1654_v11  ;;  %v1656_v18 = vmul.f32 -1.442695, %v1086_v15 }
 0x3e0   :  { %v1831_v20 = vpop.eup %1830  ;;  %1842 = vpow2.f32 %v1655_v17 }
 0x3e1   :  { %v1833_v51 = vpop.eup %1832  ;;  %v1119_v57 = vadd.f32 1.0, %v1831_v20  ;;  %1844 = vpow2.f32 %v1656_v18  ;;  %v1011_v21 = vpop.f32.mrb[20].mxu1 }
 0x3e2   :  { %v1835_v22 = vpop.eup %1834  ;;  %v1120_v24 = vadd.f32 1.0, %v1833_v51  ;;  %v1013_v25 = vpop.f32.mrb[21].mxu1  ;;  %v1087_v28 = vadd.f32 %v1062_v23, %v1011_v21  ;;  %v1775_v21 = vld [vmem:[%s2516_s13 + $0x20] sm:$0xff]  }
 0x3e3   :  { %v1837_v26 = vpop.eup %1836  ;;  %1846 = vrcp.f32 %v1119_v57  ;;  %v1121_v27 = vadd.f32 1.0, %v1835_v22  ;;  %v1015_v29 = vpop.f32.mrb[22].mxu1  ;;  %v1088_v32 = vadd.f32 %v1062_v23, %v1013_v25  ;;  %v1776_v22 = vld [vmem:[%s2516_s13 + $0x28] sm:$0xff]   ;;  %v1777_v23 = vld [vmem:[%s2516_s13 + $0x30] sm:$0xff]  }
 0x3e4   :  { %1848 = vrcp.f32 %v1120_v24  ;;  %v1122_v31 = vadd.f32 1.0, %v1837_v26  ;;  %v1017_v63 = vpop.f32.mrb[23].mxu1  ;;  %v1089_v14 = vadd.f32 %v1067_v30, %v1015_v29  ;;  %v1778_v24 = vld [vmem:[%s2516_s13 + $0x38] sm:$0xff]   ;;  %v749_v29 = vpop.permute.xlu0 %748 }
 0x3e5   :  { %1850 = vrcp.f32 %v1121_v27  ;;  %v1090_v3 = vadd.f32 %v1067_v30, %v1017_v63  ;;  %v754_v30 = vpop.permute.xlu1 %753 }
 0x3e6   :  { %1852 = vrcp.f32 %v1122_v31 }
 0x3e7   :  { %1854 = vtanh.f32 %v1087_v28 }
 0x3e8   :  { %v1839_v9 = vpop.eup %1838  ;;  %1856 = vtanh.f32 %v1088_v32  ;;  %v1200_v63 = vpop.permute.xlu0 %1199 }
 0x3e9   :  { %v1841_v7 = vpop.eup %1840  ;;  %v1123_v16 = vadd.f32 1.0, %v1839_v9  ;;  %1858 = vtanh.f32 %v1089_v14  ;;  %v1021_v33 = vpop.f32.mrb[24].mxu1 }
 0x3ea   :  { %v1843_v34 = vpop.eup %1842  ;;  %v1124_v36 = vadd.f32 1.0, %v1841_v7  ;;  %1860 = vtanh.f32 %v1090_v3  ;;  %v1023_v37 = vpop.f32.mrb[25].mxu1  ;;  %v1091_v19 = vadd.f32 %v1072_v35, %v1021_v33  ;;  %v1695_v7 = vadd.f32 %v1200_v63, %v749_v29 }
 0x3eb   :  { %v1845_v38 = vpop.eup %1844  ;;  %1862 = vrcp.f32 %v1123_v16  ;;  %v1125_v13 = vadd.f32 1.0, %v1843_v34  ;;  %v1025_v39 = vpop.f32.mrb[26].mxu1  ;;  %v1092_v43 = vadd.f32 %v1072_v35, %v1023_v37 }
 0x3ec   :  { %1864 = vrcp.f32 %v1124_v36  ;;  %v1126_v42 = vadd.f32 1.0, %v1845_v38  ;;  %v1027_v45 = vpop.f32.mrb[27].mxu1  ;;  %v1093_v48 = vadd.f32 %v1077_v40, %v1025_v39  ;;  %v1205_v9 = vpop.permute.xlu1 %1204 }
 0x3ed   :  { %v1847_v47 = vpop.eup %1846  ;;  %1866 = vrcp.f32 %v1125_v13  ;;  %v1094_v53 = vadd.f32 %v1077_v40, %v1027_v45  ;;  %v759_v16 = vpop.permute.xlu0 %758  ;;  %v1699_v34 = vadd.f32 %v1205_v9, %v754_v30 }
 0x3ee   :  { %v1849_v50 = vpop.eup %1848  ;;  %1868 = vrcp.f32 %v1126_v42 }
 0x3ef   :  { %v1851_v55 = vpop.eup %1850  ;;  %1870 = vtanh.f32 %v1091_v19 }
 0x3f0   :  { %v1853_v56 = vpop.eup %1852  ;;  %1872 = vtanh.f32 %v1092_v43  ;;  %v764_v37 = vpop.permute.xlu1 %763 }
 0x3f1   :  { %v1855_v58 = vpop.eup %1854  ;;  %1874 = vtanh.f32 %v1093_v48  ;;  %v1210_v45 = vpop.permute.xlu0 %1209 }
 0x3f2   :  { %v1857_v59 = vpop.eup %1856  ;;  %1876 = vtanh.f32 %v1094_v53  ;;  %v1151_v60 = vmul.f32 %v1855_v58, %v1847_v47 }
 0x3f3   :  { %v1859_v61 = vpop.eup %1858  ;;  %v1152_v62 = vmul.f32 %v1857_v59, %v1849_v50  ;;  %v1703_v50 = vadd.f32 %v1210_v45, %v759_v16 }
 0x3f4   :  { %v1861_v0 = vpop.eup %1860  ;;  %v1153_v2 = vmul.f32 %v1859_v61, %v1851_v55  ;;  %v1215_v55 = vpop.permute.xlu1 %1214 }
 0x3f5   :  { %v1863_v4 = vpop.eup %1862  ;;  %v1154_v41 = vmul.f32 %v1861_v0, %v1853_v56  ;;  %v1707_v59 = vadd.f32 %v1215_v55, %v764_v37 }
 0x3f6   :  { %v1865_v52 = vpop.eup %1864  ;;  %v1159_v44 = vpack.c.bf16 %v1153_v2, %v1151_v60 }
 0x3f7   :  { %v1867_v49 = vpop.eup %1866  ;;  %v1160_v46 = vpack.c.bf16 %v1154_v41, %v1152_v62 }
 0x3f8   :  { %v1869_v54 = vpop.eup %1868 }
 0x3f9   :  { %v1871_v5 = vpop.eup %1870  ;;  %1249 = vmatprep.subr.bf16.mxu0 %v1160_v46 }
 0x3fa   :  { %v1873_v6 = vpop.eup %1872  ;;  %1250 = vmatpush1.bf16.msra.mxu0 %v1159_v44  ;;  %v1155_v8 = vmul.f32 %v1871_v5, %v1863_v4 }
 0x3fb   :  { %v1875_v11 = vpop.eup %1874  ;;  %v1156_v15 = vmul.f32 %v1873_v6, %v1865_v52  ;;  %v1779_v6 = vld [vmem:[%s2518_s15] sm:$0xff]  }
 0x3fc   :  { %v1877_v17 = vpop.eup %1876  ;;  %v1157_v18 = vmul.f32 %v1875_v11, %v1867_v49  ;;  %v1345_v11 = vpop.permute.xlu0 %1344 }
 0x3fd   :  { %v1158_v20 = vmul.f32 %v1877_v17, %v1869_v54 }
 0x3fe   :  { %v1161_v51 = vpack.c.bf16 %v1157_v18, %v1155_v8  ;;  %v1780_v8 = vld [vmem:[%s2518_s15 + $0x8] sm:$0xff]  }
 0x3ff   :  { %v1162_v57 = vpack.c.bf16 %v1158_v20, %v1156_v15  ;;  %v1350_v20 = vpop.permute.xlu1 %1349 }
 0x400   :  { %v1355_v29 = vpop.permute.xlu0 %1354 }
 0x401   :  { %1251 = vmatprep.subr.bf16.mxu0 %v1162_v57 }
 0x402   :  { %1252 = vmatpush1.bf16.msra.mxu0 %v1161_v51 }
 0x403   :  { %v1360_v63 = vpop.permute.xlu1 %1359 }
 0x405   :  { %1677 = vmatmul.mubr.msk.bf16.vlgmr.msra.gmra.mrb[28].mxu0 %vm307_vm1, %v1775_v21 }
 0x406   :  { %1287 = vmatprep.mubr.bf16.mxu0 %v1906_v1 }
 0x407   :  { %v1455_v45 = vpop.permute.xlu1 %1454 }
 0x40d   :  { %1678 = vmatmul.mubr.msk.bf16.gmra.mrb[32].mxu0 %vm307_vm1, %v1776_v22 }
 0x40e   :  { %1293 = vmatprep.mubr.bf16.mxu0 %v1906_v1 }
 0x415   :  { %1679 = vmatmul.mubr.msk.bf16.gmra.mrb[20].mxu0 %vm307_vm1, %v1777_v23 }
 0x416   :  { %1303 = vmatprep.mubr.bf16.mxu0 %v1906_v1 }
 0x41d   :  { %1680 = vmatmul.mubr.msk.bf16.gmra.mrb[24].mxu0 %vm307_vm1, %v1778_v24 }
 0x41e   :  { %1410 = vmatprep.mubr.bf16.mxu0 %v1906_v1 }
 0x4d8   :  { %v1283_v25 = vpop.f32.mrb[28].mxu0 }
 0x4d9   :  { %v1284_v26 = vpop.f32.mrb[29].mxu0 }
 0x4da   :  { %v1285_v27 = vpop.f32.mrb[30].mxu0 }
 0x4db   :  { %v1286_v28 = vpop.f32.mrb[31].mxu0 }
 0x4e0   :  { %v1289_v31 = vpop.f32.mrb[32].mxu0 }
 0x4e1   :  { %v1290_v32 = vpop.f32.mrb[33].mxu0 }
 0x4e2   :  { %v1291_v14 = vpop.f32.mrb[34].mxu0 }
 0x4e3   :  { %v1292_v3 = vpop.f32.mrb[35].mxu0 }
 0x4e8   :  { %v1295_v33 = vpop.f32.mrb[20].mxu0 }
 0x4e9   :  { %v1696_v35 = vadd.f32 %v1695_v7, %v1295_v33  ;;  %v1297_v36 = vpop.f32.mrb[21].mxu0 }
 0x4ea   :  { %v1698_v38 = vadd.f32 %v1695_v7, %v1297_v36  ;;  %v1299_v13 = vpop.f32.mrb[22].mxu0 }
 0x4eb   :  { %v1700_v19 = vadd.f32 %v1699_v34, %v1299_v13  ;;  %v1301_v39 = vpop.f32.mrb[23].mxu0  ;;  %v1322_v42 = vmul.f32 0.70710677, %v1696_v35  ;;  %v1781_v13 = vld [vmem:[%s2520_s17] sm:$0xff]  }
 0x4ec   :  { %v1702_v40 = vadd.f32 %v1699_v34, %v1301_v39  ;;  %v1323_v47 = vmul.f32 0.70710677, %v1698_v38 }
 0x4ed   :  { %v1324_v43 = vmul.f32 0.70710677, %v1700_v19  ;;  %v1450_v19 = vpop.permute.xlu0 %1449 }
 0x4ee   :  { %v1325_v48 = vmul.f32 0.70710677, %v1702_v40  ;;  %v1520_v40 = vld [vmem:[%s2509_s6] sm:$0x3] }
 0x4ef   :  { %v1334_v53 = vpack.c.bf16 %v1324_v43, %v1322_v42  ;;  %v1525_v55 = vrot.slane %v1520_v40, %v2048_v12  ;;  %v1880_v12 = vld [vmem:[%s2538_s5 + $0x10] sm:$0xff] }
 0x4f0   :  { %v1335_v56 = vpack.c.bf16 %v1325_v48, %v1323_v47  ;;  %v1305_v58 = vpop.f32.mrb[24].mxu0 }
 0x4f1   :  { %v1704_v60 = vadd.f32 %v1703_v50, %v1305_v58  ;;  %v1307_v61 = vpop.f32.mrb[25].mxu0 }
 0x4f2   :  { %v1706_v62 = vadd.f32 %v1703_v50, %v1307_v61  ;;  %v1309_v0 = vpop.f32.mrb[26].mxu0  ;;  %1378 = vmatprep.subr.bf16.mxu0 %v1335_v56  ;;  %v1878_v50 = vld [vmem:[%s2538_s5] sm:$0xff]  ;;  %v1529_v61 = vrot.slane %v1520_v40, %v2043_v10  ;;  %v1881_v10 = vld [vmem:[%s2538_s5 + $0x18] sm:$0xff] }
 0x4f3   :  { %v1708_v2 = vadd.f32 %v1707_v59, %v1309_v0  ;;  %v1311_v4 = vpop.f32.mrb[27].mxu0  ;;  %1379 = vmatpush1.bf16.msra.mxu0 %v1334_v53  ;;  %v1326_v52 = vmul.f32 0.70710677, %v1704_v60 }
 0x4f4   :  { %v1710_v41 = vadd.f32 %v1707_v59, %v1311_v4  ;;  %v1327_v49 = vmul.f32 0.70710677, %v1706_v62  ;;  %v1879_v59 = vld [vmem:[%s2538_s5 + $0x8] sm:$0xff] }
 0x4f5   :  { %v1328_v44 = vmul.f32 0.70710677, %v1708_v2 }
 0x4f6   :  { %v1329_v46 = vmul.f32 0.70710677, %v1710_v41 }
 0x4f7   :  { %v1336_v54 = vpack.c.bf16 %v1328_v44, %v1326_v52 }
 0x4f8   :  { %v1337_v5 = vpack.c.bf16 %v1329_v46, %v1327_v49 }
 0x4fa   :  { %1380 = vmatprep.subr.bf16.mxu0 %v1337_v5 }
 0x4fb   :  { %1381 = vmatpush1.bf16.msra.mxu0 %v1336_v54 }
 0x4fe   :  { %1683 = vmatmul.mubr.msk.bf16.vlgmr.msra.gmra.mrb[36].mxu0 %vm307_vm1, %v1779_v6 }
 0x4ff   :  { %1420 = vmatprep.mubr.bf16.mxu0 %v1906_v1 }
 0x506   :  { %1684 = vmatmul.mubr.msk.bf16.gmra.mrb[40].mxu0 %vm307_vm1, %v1780_v8 }
 0x507   :  { %1497 = vmatprep.mubr.bf16.mxu0 %v1906_v1 }
 0x5d1   :  { %v1412_v15 = vpop.f32.mrb[36].mxu0 }
 0x5d2   :  { %v1413_v17 = vadd.f32 %v1412_v15, %v1345_v11  ;;  %v1414_v18 = vpop.f32.mrb[37].mxu0 }
 0x5d3   :  { %v1415_v51 = vadd.f32 %v1414_v18, %v1345_v11  ;;  %v1416_v57 = vpop.f32.mrb[38].mxu0 }
 0x5d4   :  { %v1417_v21 = vadd.f32 %v1416_v57, %v1350_v20  ;;  %v1418_v22 = vpop.f32.mrb[39].mxu0  ;;  %v1431_v24 = vmax.f32 %v1413_v17, 0.0 }
 0x5d5   :  { %v1419_v23 = vadd.f32 %v1418_v22, %v1350_v20  ;;  %v1432_v26 = vmax.f32 %v1415_v51, 0.0 }
 0x5d6   :  { %v1433_v25 = vmax.f32 %v1417_v21, 0.0 }
 0x5d7   :  { %v1434_v27 = vmax.f32 %v1419_v23, 0.0 }
 0x5d8   :  { %v1441_v28 = vpack.c.bf16 %v1433_v25, %v1431_v24 }
 0x5d9   :  { %v1442_v30 = vpack.c.bf16 %v1434_v27, %v1432_v26  ;;  %v1422_v31 = vpop.f32.mrb[40].mxu0 }
 0x5da   :  { %v1423_v32 = vadd.f32 %v1422_v31, %v1355_v29  ;;  %v1424_v1 = vpop.f32.mrb[41].mxu0 }
 0x5db   :  { %v1425_v14 = vadd.f32 %v1424_v1, %v1355_v29  ;;  %v1426_v3 = vpop.f32.mrb[42].mxu0  ;;  %1465 = vmatprep.subr.bf16.mxu0 %v1442_v30 }
 0x5dc   :  { %v1427_v9 = vadd.f32 %v1426_v3, %v1360_v63  ;;  %v1428_v7 = vpop.f32.mrb[43].mxu0  ;;  %1466 = vmatpush1.bf16.msra.mxu0 %v1441_v28  ;;  %v1435_v33 = vmax.f32 %v1423_v32, 0.0 }
 0x5dd   :  { %v1429_v16 = vadd.f32 %v1428_v7, %v1360_v63  ;;  %v1436_v35 = vmax.f32 %v1425_v14, 0.0 }
 0x5de   :  { %v1437_v34 = vmax.f32 %v1427_v9, 0.0 }
 0x5df   :  { %v1438_v36 = vmax.f32 %v1429_v16, 0.0 }
 0x5e0   :  { %v1443_v37 = vpack.c.bf16 %v1437_v34, %v1435_v33 }
 0x5e1   :  { %v1444_v38 = vpack.c.bf16 %v1438_v36, %v1436_v35 }
 0x5e3   :  { %1467 = vmatprep.subr.bf16.mxu0 %v1444_v38 }
 0x5e4   :  { %1468 = vmatpush1.bf16.msra.mxu0 %v1443_v37 }
 0x5e7   :  { %1686 = vmatmul.mubr.msk.bf16.vlgmr.msra.gmra.mrb[44].mxu0 %vm307_vm1, %v1781_v13 }
 0x6ba   :  { %v1499_v39 = vpop.f32.mrb[44].mxu0 }
 0x6bb   :  { %v1500_v42 = vadd.f32 %v1499_v39, %v1450_v19  ;;  %v1501_v43 = vpop.f32.mrb[45].mxu0 }
 0x6bc   :  { %v1502_v47 = vadd.f32 %v1501_v43, %v1450_v19  ;;  %v1503_v48 = vpop.f32.mrb[46].mxu0 }
 0x6bd   :  { %1508 = vst [vmem:[%s2523_s20] sm:$0xff] %v1500_v42  ;;  %v1512_v53 = vsub.f32 %v1878_v50, %v1500_v42  ;;  %v1504_v56 = vadd.f32 %v1503_v48, %v1455_v45  ;;  %v1505_v58 = vpop.f32.mrb[47].mxu0 }
 0x6be   :  { %1509 = vst [vmem:[%s2523_s20 + $0x8] sm:$0xff] %v1502_v47  ;;  %v1513_v60 = vsub.f32 %v1879_v59, %v1502_v47  ;;  %v1506_v62 = vadd.f32 %v1505_v58, %v1455_v45 }
 0x6bf   :  { %v1516_v0 = vand.u32 2147483647, %v1512_v53  ;;  %1510 = vst [vmem:[%s2523_s20 + $0x10] sm:$0xff] %v1504_v56  ;;  %v1514_v2 = vsub.f32 %v1880_v12, %v1504_v56 }
 0x6c0   :  { %v1517_v4 = vand.u32 2147483647, %v1513_v60  ;;  %1511 = vst [vmem:[%s2523_s20 + $0x18] sm:$0xff] %v1506_v62  ;;  %v1515_v41 = vsub.f32 %v1881_v10, %v1506_v62  ;;  %s1907_s20 = smov [#allocation2]  }
 0x6c1   :  { %v1532_v52 = vmul.f32 %v1525_v55, %v1516_v0  ;;  %v1518_v44 = vand.u32 2147483647, %v1514_v2  ;;  %s1561_s5 = sshll.u32 %s1907_s20, 4  ;;  %s1562_s5 = int_to_ptr.vmem [resolvable:$true] %s1561_s5 }
 0x6c2   :  { %v1533_v49 = vmul.f32 %v1529_v61, %v1517_v4  ;;  %v1519_v46 = vand.u32 2147483647, %v1515_v41  ;;  %s1882_s2 = scalar_lea.vmem %s1562_s5, 16  ;;  %s1886_s28 = scalar_lea.vmem %s1562_s5, 32 }
 0x6c3   :  { %v1534_v54 = vmul.f32 %v1525_v55, %v1518_v44  ;;  %p1883_p0 = scmp.ne.s32.totalorder %s1562_s5, %s1882_s2  ;;  %p1887_p1 = scmp.lt.s32.totalorder %s1562_s5, %s1562_s5 }
 0x6c4   :  { %v1536_v5 = vadd.f32 %v1533_v49, %v1532_v52  ;;  %v1535_v6 = vmul.f32 %v1529_v61, %v1519_v46  ;;  %p1888_p2 = scmp.lt.s32.totalorder %s1886_s28, %s1882_s2 }
 0x6c6   :  { %v1537_v8 = vadd.f32 %v1536_v5, %v1534_v54  ;;  %p1889_p3 = por %p1888_p2, %p1887_p1 }
 0x6c8   :  { %v1538_v11 = vadd.f32 %v1537_v8, %v1535_v6  ;;  %p1890_p4 = pnand %p1889_p3, %p1883_p0 }
 0x6ca   :  { %1539 = vadd.xlane.f32.xlu0 %v1538_v11 }
 0x757   :  { %v1540_v15 = vpop.xlane.xlu0 %1539 }
 0x758   :  { %v1541_v17 = vrot.slane %v1540_v15, 4 }
 0x75a   :  { %v1542_v18 = vadd.f32 %v1541_v17, %v1540_v15 }
 0x75c   :  { %v1543_v20 = vrot.slane %v1542_v18, 2 }
 0x75e   :  { %v1544_v51 = vadd.f32 %v1543_v20, %v1542_v18 }
 0x760   :  { %v1545_v57 = vrot.slane %v1544_v51, 1 }
 0x762   :  { %v1546_v21 = vadd.f32 %v1545_v57, %v1544_v51 }
 0x764   :  { %1747 = vpush %v1546_v21 }
 0x795   :  { %s1748_s24 = spop %1747 }
 0x796   :  { %v1548_v22 = vstv %s1748_s24 }
 0x797   :  { %1550 = vst.msk [vmem:[#allocation2] sm:$0x1] %vm1549_vm2, %v1548_v22 }
 0x798   :  { %1893 = shalt.err (!%p1890_p4)
}
 0x799   :  { %s2542_s13 = sld [smem:[#allocation11_spill]] }
 0x79f   :  { %s1894_s21 = scalar_lea.hbm %s2542_s13, 16 }
 0x7a0   :  { %p1895_p5 = scmp.ne.s32.totalorder %s2542_s13, %s1894_s21  ;;  %p1898_p6 = scmp.lt.u32.totalorder %s1894_s21, %s2542_s13 }
 0x7a2   :  { %p1900_p7 = pnand %p1898_p6, %p1895_p5 }
 0x7a4   :  { %1903 = shalt.err (!%p1900_p7)
}
 0x7a5   :  { %1564 = dma.vmem_to_hbm [thread:$0]  %s1562_s5, 16, %s2542_s13, [#allocation3]  }
 0x7a6   :  { %1904 = dma.done.wait [#allocation3], 16  }
 0x7a7   :  { %1905 = vsyncadd [#allocation3], 4294967280 }
 0x7a8   :  { %1572 = vsyncpa [#allocation3], 1 }

</bundles_post_ra>
